<compile_context>
chip_gen: v7x
topology: tpu7x:2x2x1
jax: 0.10.0
libtpu: 0.0.40
codegen_flags: <defaults>
</compile_context>

<pallas_src>
import functools
import math

import jax
import jax.numpy as jnp
from jax import lax
from jax.experimental import pallas as pl
from jax.experimental.pallas import tpu as pltpu

LN_EPS = 1e-5  # nn.LayerNorm / TransformerEncoderLayer default
_MIB = 1024 * 1024


# ---------------------------------------------------------------- helpers ---

def _layer_norm(x, gamma, beta):
    mean = jnp.mean(x, axis=-1, keepdims=True)
    var = jnp.mean(jnp.square(x - mean), axis=-1, keepdims=True)
    return (x - mean) * lax.rsqrt(var + LN_EPS) * gamma + beta


def _round_up(n, m):
    return ((n + m - 1) // m) * m


def _device_kind():
    try:
        return jax.devices()[0].device_kind.lower()
    except Exception:
        return ""


def _num_batch_shards(B, L):
    """Shard the batch across the two v7x TensorCores only when each shard
    still feeds the MXU a reasonable M dim (>= 256 token rows, sublane-whole)."""
    kind = _device_kind()
    if "v7" not in kind:
        return 1
    if B % 2 == 0 and ((B // 2) * L) >= 256 and ((B // 2) * L) % 8 == 0:
        return 2
    return 1


def _clamp_vmem(nbytes):
    # Explicit scoped-VMEM budget with headroom; never exceed v7x's 64 MiB/TC.
    return int(min(max(nbytes, 32 * _MIB), 64 * _MIB))


def _encoder_vmem_bytes(N, H, F):
    io = 2 * 2 * N * H * 4                      # x_in + x_out blocks, dbl-buffered
    scr = N * H * 4                             # carried activation scratch
    wts = 2 * (4 * H * H + 2 * H * F) * 2       # per-layer bf16 weights, dbl-buffered
    small = 2 * (11 * H + F) * 4                # biases / LayerNorm params
    work = 6 * N * max(H, F) * 4                # qkv / attention / ffn temporaries
    return io + scr + wts + small + work


def _head_vmem_bytes(N, H, tile_v):
    return 2 * N * H * 4 + 2 * (H * tile_v * 2 + tile_v * 4 + N * tile_v * 4)


# ---------------------------------------------------------------- kernels ---

def encoder_layer_kernel(x_in_ref, norm_ref, wq_ref, wk_ref, wv_ref, wo_ref,
                         w1_ref, w2_ref, bh_ref, b1_ref, ln_ref,
                         x_out_ref, x_scr, *, num_heads, seq_len):
    """One TransformerEncoderLayer per grid step along axis 1 (layer axis)."""
    # TODO(synk): dropout is identity (inference mode; drop_prob is a free
    # global in the reference module).
    l = pl.program_id(1)

    @pl.when(l == 0)
    def _():
        # Initial LayerNorm of the embedding stack, once per batch shard.
        x_scr[...] = _layer_norm(x_in_ref[...], norm_ref[0:1, :], norm_ref[1:2, :])

    x = x_scr[...]                                  # [N, H] f32, carried across layers
    N, H = x.shape
    hd = H // num_heads
    L = seq_len
    Bs = N // L

    bh = bh_ref[0]                                  # [5, H]: bq*scale, bk, bv, bo, b2
    x_bf = x.astype(jnp.bfloat16)

    # ---- self-attention: three dots against per-layer bf16 weight blocks ----
    q = jnp.dot(x_bf, wq_ref[0], preferred_element_type=jnp.float32) + bh[0:1, :]
    k = jnp.dot(x_bf, wk_ref[0], preferred_element_type=jnp.float32) + bh[1:2, :]
    v = jnp.dot(x_bf, wv_ref[0], preferred_element_type=jnp.float32) + bh[2:3, :]
    q3 = q.reshape(Bs, L, H).astype(jnp.bfloat16)   # single bf16 cast per tensor
    k3 = k.reshape(Bs, L, H).astype(jnp.bfloat16)
    v3 = v.reshape(Bs, L, H).astype(jnp.bfloat16)

    # TODO(synk): folding heads into the einsum batch dim needs a
    # minor-dim-splitting relayout ([N, nh*hd] -> [Bs*nh, L, hd]) that Mosaic
    # may reject for H % 128 != 0; the known-safe per-head 3-D batched einsum
    # (same form as the flash-attention reference) is kept instead.
    heads = []
    for h in range(num_heads):                      # static unroll over heads
        sl = slice(h * hd, (h + 1) * hd)
        s = jnp.einsum('bqd,bkd->bqk', q3[:, :, sl], k3[:, :, sl],
                       preferred_element_type=jnp.float32)
        s = s - jnp.max(s, axis=-1, keepdims=True)
        p = jnp.exp(s)
        p = p * pl.reciprocal(jnp.sum(p, axis=-1, keepdims=True), approx=True)
        heads.append(jnp.einsum('bqk,bkd->bqd', p.astype(jnp.bfloat16),
                                v3[:, :, sl],
                                preferred_element_type=jnp.float32
                                ).astype(jnp.bfloat16))
    attn = jnp.concatenate(heads, axis=-1).reshape(N, H)          # bf16
    attn = jnp.dot(attn, wo_ref[0], preferred_element_type=jnp.float32) + bh[3:4, :]

    ln = ln_ref[0]                                  # [4, H]: g1, b1, g2, b2
    h1 = _layer_norm(x + attn, ln[0:1, :], ln[1:2, :])            # post-norm

    # ---- feed-forward: relu(h1 @ W1 + b1) @ W2 + b2 --------------------------
    f = jnp.dot(h1.astype(jnp.bfloat16), w1_ref[0],
                preferred_element_type=jnp.float32) + b1_ref[0]
    f = jnp.maximum(f, 0.0)
    f = jnp.dot(f.astype(jnp.bfloat16), w2_ref[0],
                preferred_element_type=jnp.float32) + bh[4:5, :]
    x_new = _layer_norm(h1 + f, ln[2:3, :], ln[3:4, :])
    x_scr[...] = x_new

    @pl.when(l == pl.num_programs(1) - 1)
    def _():
        x_out_ref[...] = x_new


def head_kernel(x_ref, w_ref, b_ref, o_ref):
    """Fused output heads: one lane-dense [N, H] x [H, TILE_V] GEMM per tile."""
    x_bf = x_ref[...].astype(jnp.bfloat16)
    o_ref[...] = jnp.dot(x_bf, w_ref[...],
                         preferred_element_type=jnp.float32) + b_ref[...]


# --------------------------------------------------------------- packing ----

def pack_params(params, num_heads):
    """One-time packing: stack per-layer weights along a leading [num_layers]
    axis, fold the 1/sqrt(hd) attention scale into Wq/bq, pre-cast all matmul
    weights to bf16, and fuse + 128-pad the three output heads."""
    H = params['norm_g'].shape[0]
    hd = H // num_heads
    scale = 1.0 / math.sqrt(hd)
    bf16 = jnp.bfloat16

    wq, wk, wv, wo, w1, w2, bias_h, b1, ln = ([] for _ in range(9))
    for lp in params['layers']:
        wq.append((lp['wq'] * scale).astype(bf16))
        wk.append(lp['wk'].astype(bf16))
        wv.append(lp['wv'].astype(bf16))
        wo.append(lp['wo'].astype(bf16))
        w1.append(lp['w1'].astype(bf16))
        w2.append(lp['w2'].astype(bf16))
        bias_h.append(jnp.stack([lp['bq'] * scale, lp['bk'], lp['bv'],
                                 lp['bo'], lp['b2']]))
        b1.append(lp['b1'][None, :])
        ln.append(jnp.stack([lp['ln1_g'], lp['ln1_b'], lp['ln2_g'], lp['ln2_b']]))

    vm = params['out_mdd_w'].shape[1]
    vp = params['out_poi_w'].shape[1]
    v_total = vm + vp + 2
    v_pad = _round_up(v_total, 128)
    whead = jnp.concatenate([params['out_mdd_w'], params['out_poi_w'],
                             params['out_type_w']], axis=1)
    bhead = jnp.concatenate([params['out_mdd_b'], params['out_poi_b'],
                             params['out_type_b']])
    whead = jnp.pad(whead, ((0, 0), (0, v_pad - v_total))).astype(bf16)
    bhead = jnp.pad(bhead, (0, v_pad - v_total))[None, :]

    return dict(
        norm=jnp.stack([params['norm_g'], params['norm_b']]),      # [2, H]   f32
        wq=jnp.stack(wq), wk=jnp.stack(wk), wv=jnp.stack(wv),      # [nl,H,H] bf16
        wo=jnp.stack(wo),                                          # [nl,H,H] bf16
        w1=jnp.stack(w1), w2=jnp.stack(w2),                        # FFN      bf16
        bias_h=jnp.stack(bias_h),                                  # [nl,5,H] f32
        b1=jnp.stack(b1),                                          # [nl,1,F] f32
        ln=jnp.stack(ln),                                          # [nl,4,H] f32
        whead=whead, bhead=bhead,                                  # [H,VP] bf16, [1,VP] f32
        vocab_splits=(vm, vp),
    )


# --------------------------------------------------------------- wrapper ----

def pallas_forward(packed, combined, *, num_heads, batch_shards=None):
    B, L, H = combined.shape
    nl = packed['wq'].shape[0]
    F = packed['w1'].shape[2]
    VP = packed['whead'].shape[1]
    if batch_shards is None:
        batch_shards = _num_batch_shards(B, L)
    Bs = B // batch_shards
    N = Bs * L

    x2d = combined.reshape(B * L, H)

    wmap = lambda b, l: (l, 0, 0)     # per-layer weight blocks
    cmap = lambda b, l: (0, 0)        # constants (fetched once)
    xmap = lambda b, l: (b, 0)        # activation blocks (resident across l)

    # Deeper weight buffering only pays off on bandwidth-poor v5e with enough
    # layers in flight (never triggers at the demo config).
    kind = _device_kind()
    wt_pipe = pl.Buffered(3) if ("v5" in kind and nl >= 3) else None

    def wspec(shape):
        if wt_pipe is None:
            return pl.BlockSpec(shape, wmap)
        return pl.BlockSpec(shape, wmap, pipeline_mode=wt_pipe)

    in_specs = [
        pl.BlockSpec((N, H), xmap),                  # combined embeddings
        pl.BlockSpec((2, H), cmap),                  # initial LayerNorm params
        wspec((1, H, H)),                            # Wq (scale folded)
        wspec((1, H, H)),                            # Wk
        wspec((1, H, H)),                            # Wv
        wspec((1, H, H)),                            # Wo
        wspec((1, H, F)),                            # W1
        wspec((1, F, H)),                            # W2
        pl.BlockSpec((1, 5, H), wmap),               # bq*scale, bk, bv, bo, b2
        pl.BlockSpec((1, 1, F), wmap),               # b1
        pl.BlockSpec((1, 4, H), wmap),               # ln1_g, ln1_b, ln2_g, ln2_b
    ]

    encoded = pl.pallas_call(
        functools.partial(encoder_layer_kernel, num_heads=num_heads, seq_len=L),
        out_shape=jax.ShapeDtypeStruct((B * L, H), jnp.float32),
        grid=(batch_shards, nl),
        in_specs=in_specs,
        out_specs=pl.BlockSpec((N, H), xmap),
        scratch_shapes=[pltpu.VMEM((N, H), jnp.float32)],
        compiler_params=pltpu.CompilerParams(
            dimension_semantics=("parallel", "arbitrary"),
            vmem_limit_bytes=_clamp_vmem(2 * _encoder_vmem_bytes(N, H, F))),
    )(x2d, packed['norm'], packed['wq'], packed['wk'], packed['wv'],
      packed['wo'], packed['w1'], packed['w2'], packed['bias_h'],
      packed['b1'], packed['ln'])

    # Vocab-tiled fused output heads (lane-dense 128-multiple tiles).
    tile_v = next(t for t in (512, 256, 128) if VP % t == 0)
    logits = pl.pallas_call(
        head_kernel,
        out_shape=jax.ShapeDtypeStruct((B * L, VP), jnp.float32),
        grid=(VP // tile_v,),
        in_specs=[
            pl.BlockSpec((B * L, H), lambda v: (0, 0)),      # encoded (resident)
            pl.BlockSpec((H, tile_v), lambda v: (0, v)),     # whead tile
            pl.BlockSpec((1, tile_v), lambda v: (0, v)),     # bhead tile
        ],
        out_specs=pl.BlockSpec((B * L, tile_v), lambda v: (0, v)),
        compiler_params=pltpu.CompilerParams(
            dimension_semantics=("parallel",),
            vmem_limit_bytes=_clamp_vmem(2 * _head_vmem_bytes(B * L, H, tile_v))),
    )(encoded, packed['whead'], packed['bhead'])

    logits = logits.reshape(B, L, VP)
    vm, vp = packed['vocab_splits']
    return (logits[..., :vm],
            logits[..., vm:vm + vp],
            logits[..., vm + vp:vm + vp + 2])


# ---------------------------------------------------------------- model -----

def init_params(key, mdd_vocab, poi_vocab, E, num_heads, num_layers, bert_out_dim):
    H = E + bert_out_dim
    F = E * 4
    keys = iter(jax.random.split(key, 8 + 16 * num_layers))

    def w(shape, scale=0.02):
        return (scale * jax.random.normal(next(keys), shape)).astype(jnp.float32)

    params = dict(
        mdd_emb=w((mdd_vocab, E)),
        poi_emb=w((poi_vocab, E)),
        type_emb=w((2, E)),
        dom_emb=w((2, E)),
        norm_g=jnp.ones((H,), jnp.float32),
        norm_b=jnp.zeros((H,), jnp.float32),
        out_mdd_w=w((H, mdd_vocab)), out_mdd_b=w((mdd_vocab,)),
        out_poi_w=w((H, poi_vocab)), out_poi_b=w((poi_vocab,)),
        out_type_w=w((H, 2)), out_type_b=w((2,)),
        layers=[],
    )
    for _ in range(num_layers):
        params['layers'].append(dict(
            wq=w((H, H)), bq=w((H,)), wk=w((H, H)), bk=w((H,)),
            wv=w((H, H)), bv=w((H,)), wo=w((H, H)), bo=w((H,)),
            ln1_g=jnp.ones((H,), jnp.float32), ln1_b=jnp.zeros((H,), jnp.float32),
            w1=w((H, F)), b1=w((F,)), w2=w((F, H)), b2=w((H,)),
            ln2_g=jnp.ones((H,), jnp.float32), ln2_b=jnp.zeros((H,), jnp.float32),
        ))
    return params


def _embed_glue(params, src, src_types, cls_features, domain_labels):
    """Plain-JAX glue reproducing the masked-scatter embedding construction."""
    mdd_vocab = params['mdd_emb'].shape[0]
    poi_vocab = params['poi_emb'].shape[0]
    # Clip before gather so out-of-range ids on the *unselected* table cannot
    # read OOB (PyTorch only gathers the masked entries).
    mdd_e = params['mdd_emb'][jnp.clip(src, 0, mdd_vocab - 1)]   # [B, L, E]
    poi_e = params['poi_emb'][jnp.clip(src, 0, poi_vocab - 1)]   # [B, L, E]
    sel = jnp.zeros_like(mdd_e)
    sel = jnp.where((src_types == 0)[..., None], mdd_e, sel)
    sel = jnp.where((src_types == 1)[..., None], poi_e, sel)
    type_e = params['type_emb'][src_types]                       # [B, L, E]
    dom_e = params['dom_emb'][domain_labels][:, None, :]         # [B, 1, E]
    emb = sel + type_e + dom_e
    return jnp.concatenate([emb, cls_features], axis=-1)         # [B, L, H]


def forward(params, packed, src, src_types, cls_features, domain_labels, *, num_heads):
    combined = _embed_glue(params, src, src_types, cls_features, domain_labels)
    return pallas_forward(packed, combined, num_heads=num_heads)


# ------------------------------------------------------- pure-JAX reference -

def reference_forward(params, src, src_types, cls_features, domain_labels, *, num_heads):
    x = _embed_glue(params, src, src_types, cls_features, domain_labels)
    x = _layer_norm(x, params['norm_g'], params['norm_b'])
    for lp in params['layers']:
        H = x.shape[-1]
        hd = H // num_heads
        q = x @ lp['wq'] + lp['bq']
        k = x @ lp['wk'] + lp['bk']
        v = x @ lp['wv'] + lp['bv']
        attn = jnp.zeros_like(x)
        for h in range(num_heads):
            sl = slice(h * hd, (h + 1) * hd)
            s = jnp.einsum('bqd,bkd->bqk', q[:, :, sl] / math.sqrt(hd), k[:, :, sl])
            p = jax.nn.softmax(s, axis=-1)
            oh = jnp.einsum('bqk,bkd->bqd', p, v[:, :, sl])
            attn = attn + oh @ lp['wo'][sl, :]
        attn = attn + lp['bo']
        h1 = _layer_norm(x + attn, lp['ln1_g'], lp['ln1_b'])
        f = jnp.maximum(h1 @ lp['w1'] + lp['b1'], 0.0) @ lp['w2'] + lp['b2']
        x = _layer_norm(h1 + f, lp['ln2_g'], lp['ln2_b'])
    return (x @ params['out_mdd_w'] + params['out_mdd_b'],
            x @ params['out_poi_w'] + params['out_poi_b'],
            x @ params['out_type_w'] + params['out_type_b'])


# ------------------------------------------------------------------- main ---

if __name__ == "__main__":
    B, L = 2, 8
    E, bert_out = 32, 32                 # hidden_dim H = 64
    num_heads, num_layers = 2, 2
    mdd_vocab, poi_vocab = 40, 48

    key = jax.random.PRNGKey(0)
    kp, k1, k2, k3, k4 = jax.random.split(key, 5)
    params = init_params(kp, mdd_vocab, poi_vocab, E, num_heads, num_layers, bert_out)
    packed = pack_params(params, num_heads)   # hoisted: packs / bf16-casts once

    src = jax.random.randint(k1, (B, L), 0, min(mdd_vocab, poi_vocab), dtype=jnp.int32)
    src_types = jax.random.randint(k2, (B, L), 0, 2, dtype=jnp.int32)
    cls_features = (0.1 * jax.random.normal(k3, (B, L, bert_out))).astype(jnp.float32)
    domain_labels = jax.random.randint(k4, (B,), 0, 2, dtype=jnp.int32)

    outs = forward(params, packed, src, src_types, cls_features, domain_labels,
                   num_heads=num_heads)
    outs = jax.block_until_ready(outs)

    refs = reference_forward(params, src, src_types, cls_features, domain_labels,
                             num_heads=num_heads)
    expected_shapes = [(B, L, mdd_vocab), (B, L, poi_vocab), (B, L, 2)]
    for o, r, es in zip(outs, refs, expected_shapes):
        assert o.shape == es, (o.shape, es)
        assert bool(jnp.all(jnp.isfinite(o)))
        err = float(jnp.max(jnp.abs(o - r)))
        # bf16 pre-cast weights + bf16 MXU operands + approx softmax reciprocal
        # vs a pure-f32 reference.
        assert err < 3e-2, f"mismatch vs reference: {err}"

    print("KERNEL_OK")
</pallas_src>

<mosaic_0001>
module attributes {stable_mosaic.version = 11 : i64} {
  func.func @encoder_layer_kernel(%arg0: i32, %arg1: i32, %arg2: memref<16x64xf32, #tpu.memory_space<vmem>>, %arg3: memref<2x64xf32, #tpu.memory_space<vmem>>, %arg4: memref<1x64x64xbf16, #tpu.memory_space<vmem>>, %arg5: memref<1x64x64xbf16, #tpu.memory_space<vmem>>, %arg6: memref<1x64x64xbf16, #tpu.memory_space<vmem>>, %arg7: memref<1x64x64xbf16, #tpu.memory_space<vmem>>, %arg8: memref<1x64x128xbf16, #tpu.memory_space<vmem>>, %arg9: memref<1x128x64xbf16, #tpu.memory_space<vmem>>, %arg10: memref<1x5x64xf32, #tpu.memory_space<vmem>>, %arg11: memref<1x1x128xf32, #tpu.memory_space<vmem>>, %arg12: memref<1x4x64xf32, #tpu.memory_space<vmem>>, %arg13: memref<16x64xf32, #tpu.memory_space<vmem>>, %arg14: memref<16x64xf32, #tpu.memory_space<vmem>>) attributes {dimension_semantics = [#tpu.dimension_semantics<parallel>, #tpu.dimension_semantics<arbitrary>], iteration_bounds = array<i64: 1, 2>, scalar_prefetch = 0 : i64, scratch_operands = 1 : i64, tpu.core_type = #tpu.core_type<tc>, window_params = [{transform_indices = @transform_0, window_bounds = array<i64: 16, 64>}, {pipeline_mode = #tpu.pipeline_mode<synchronous>, transform_indices = @transform_1, window_bounds = array<i64: 2, 64>}, {transform_indices = @transform_2, window_bounds = array<i64: 1, 64, 64>}, {transform_indices = @transform_3, window_bounds = array<i64: 1, 64, 64>}, {transform_indices = @transform_4, window_bounds = array<i64: 1, 64, 64>}, {transform_indices = @transform_5, window_bounds = array<i64: 1, 64, 64>}, {transform_indices = @transform_6, window_bounds = array<i64: 1, 64, 128>}, {transform_indices = @transform_7, window_bounds = array<i64: 1, 128, 64>}, {transform_indices = @transform_8, window_bounds = array<i64: 1, 5, 64>}, {transform_indices = @transform_9, window_bounds = array<i64: 1, 1, 128>}, {transform_indices = @transform_10, window_bounds = array<i64: 1, 4, 64>}, {transform_indices = @transform_11, window_bounds = array<i64: 16, 64>}]} {
    %c0_i32 = arith.constant 0 : i32
    %0 = arith.cmpi eq, %arg1, %c0_i32 : i32
    %1 = arith.extui %0 : i1 to i32
    %c0_i32_0 = arith.constant 0 : i32
    %2 = arith.cmpi ne, %1, %c0_i32_0 : i32
    scf.if %2 {
      %c0_56 = arith.constant 0 : index
      %c0_57 = arith.constant 0 : index
      %146 = vector.load %arg2[%c0_56, %c0_57] : memref<16x64xf32, #tpu.memory_space<vmem>>, vector<16x64xf32>
      %c0_58 = arith.constant 0 : index
      %c0_59 = arith.constant 0 : index
      %147 = vector.load %arg3[%c0_58, %c0_59] : memref<2x64xf32, #tpu.memory_space<vmem>>, vector<1x64xf32>
      %c1 = arith.constant 1 : index
      %c0_60 = arith.constant 0 : index
      %148 = vector.load %arg3[%c1, %c0_60] : memref<2x64xf32, #tpu.memory_space<vmem>>, vector<1x64xf32>
      %cst_61 = arith.constant dense<0.000000e+00> : vector<16xf32>
      %149 = vector.multi_reduction <add>, %146, %cst_61 [1] : vector<16x64xf32> to vector<16xf32>
      %150 = vector.shape_cast %149 : vector<16xf32> to vector<16x1xf32>
      %cst_62 = arith.constant 6.400000e+01 : f32
      %151 = vector.broadcast %cst_62 : f32 to vector<16x1xf32>
      %152 = arith.divf %150, %151 : vector<16x1xf32>
      %153 = vector.broadcast %152 : vector<16x1xf32> to vector<16x64xf32>
      %154 = arith.subf %146, %153 : vector<16x64xf32>
      %155 = arith.mulf %154, %154 : vector<16x64xf32>
      %cst_63 = arith.constant dense<0.000000e+00> : vector<16xf32>
      %156 = vector.multi_reduction <add>, %155, %cst_63 [1] : vector<16x64xf32> to vector<16xf32>
      %157 = vector.shape_cast %156 : vector<16xf32> to vector<16x1xf32>
      %cst_64 = arith.constant 6.400000e+01 : f32
      %158 = vector.broadcast %cst_64 : f32 to vector<16x1xf32>
      %159 = arith.divf %157, %158 : vector<16x1xf32>
      %160 = vector.broadcast %152 : vector<16x1xf32> to vector<16x64xf32>
      %161 = arith.subf %146, %160 : vector<16x64xf32>
      %cst_65 = arith.constant 9.99999974E-6 : f32
      %162 = vector.broadcast %cst_65 : f32 to vector<16x1xf32>
      %163 = arith.addf %159, %162 : vector<16x1xf32>
      %164 = math.rsqrt %163 : vector<16x1xf32>
      %165 = vector.broadcast %164 : vector<16x1xf32> to vector<16x64xf32>
      %166 = arith.mulf %161, %165 : vector<16x64xf32>
      %167 = vector.broadcast %147 : vector<1x64xf32> to vector<16x64xf32>
      %168 = arith.mulf %166, %167 : vector<16x64xf32>
      %169 = vector.broadcast %148 : vector<1x64xf32> to vector<16x64xf32>
      %170 = arith.addf %168, %169 : vector<16x64xf32>
      %c0_66 = arith.constant 0 : index
      %c0_67 = arith.constant 0 : index
      %171 = vector.load %arg14[%c0_66, %c0_67] : memref<16x64xf32, #tpu.memory_space<vmem>>, vector<16x64xf32>
      tpu.vector_store %arg14[%c0_66, %c0_67], %170 {strides = array<i32>} : memref<16x64xf32, #tpu.memory_space<vmem>>, vector<16x64xf32>,
    } else {
    }
    %c0 = arith.constant 0 : index
    %c0_1 = arith.constant 0 : index
    %3 = vector.load %arg14[%c0, %c0_1] : memref<16x64xf32, #tpu.memory_space<vmem>>, vector<16x64xf32>
    %c0_2 = arith.constant 0 : index
    %c0_3 = arith.constant 0 : index
    %c0_4 = arith.constant 0 : index
    %4 = vector.load %arg10[%c0_2, %c0_3, %c0_4] : memref<1x5x64xf32, #tpu.memory_space<vmem>>, vector<1x5x64xf32>
    %5 = vector.shape_cast %4 : vector<1x5x64xf32> to vector<5x64xf32>
    %6 = arith.truncf %3 : vector<16x64xf32> to vector<16x64xbf16>
    %c0_5 = arith.constant 0 : index
    %c0_6 = arith.constant 0 : index
    %c0_7 = arith.constant 0 : index
    %7 = vector.load %arg4[%c0_5, %c0_6, %c0_7] : memref<1x64x64xbf16, #tpu.memory_space<vmem>>, vector<1x64x64xbf16>
    %8 = vector.shape_cast %7 : vector<1x64x64xbf16> to vector<64x64xbf16>
    %cst = arith.constant dense<0.000000e+00> : vector<16x64xf32>
    %9 = tpu.matmul %6, %8, %cst {dimension_numbers = #tpu.dot_dimension_numbers<[1], [0], [0], [1], [0, 0, 1, 1], [], []>} : vector<16x64xbf16>, vector<64x64xbf16>, vector<16x64xf32> -> vector<16x64xf32>
    %10 = vector.extract_strided_slice %5 {offsets = [0, 0], sizes = [1, 64], strides = [1, 1]} : vector<5x64xf32> to vector<1x64xf32>
    %11 = vector.broadcast %10 : vector<1x64xf32> to vector<16x64xf32>
    %12 = arith.addf %9, %11 : vector<16x64xf32>
    %c0_8 = arith.constant 0 : index
    %c0_9 = arith.constant 0 : index
    %c0_10 = arith.constant 0 : index
    %13 = vector.load %arg5[%c0_8, %c0_9, %c0_10] : memref<1x64x64xbf16, #tpu.memory_space<vmem>>, vector<1x64x64xbf16>
    %14 = vector.shape_cast %13 : vector<1x64x64xbf16> to vector<64x64xbf16>
    %cst_11 = arith.constant dense<0.000000e+00> : vector<16x64xf32>
    %15 = tpu.matmul %6, %14, %cst_11 {dimension_numbers = #tpu.dot_dimension_numbers<[1], [0], [0], [1], [0, 0, 1, 1], [], []>} : vector<16x64xbf16>, vector<64x64xbf16>, vector<16x64xf32> -> vector<16x64xf32>
    %16 = vector.extract_strided_slice %5 {offsets = [1, 0], sizes = [1, 64], strides = [1, 1]} : vector<5x64xf32> to vector<1x64xf32>
    %17 = vector.broadcast %16 : vector<1x64xf32> to vector<16x64xf32>
    %18 = arith.addf %15, %17 : vector<16x64xf32>
    %c0_12 = arith.constant 0 : index
    %c0_13 = arith.constant 0 : index
    %c0_14 = arith.constant 0 : index
    %19 = vector.load %arg6[%c0_12, %c0_13, %c0_14] : memref<1x64x64xbf16, #tpu.memory_space<vmem>>, vector<1x64x64xbf16>
    %20 = vector.shape_cast %19 : vector<1x64x64xbf16> to vector<64x64xbf16>
    %cst_15 = arith.constant dense<0.000000e+00> : vector<16x64xf32>
    %21 = tpu.matmul %6, %20, %cst_15 {dimension_numbers = #tpu.dot_dimension_numbers<[1], [0], [0], [1], [0, 0, 1, 1], [], []>} : vector<16x64xbf16>, vector<64x64xbf16>, vector<16x64xf32> -> vector<16x64xf32>
    %22 = vector.extract_strided_slice %5 {offsets = [2, 0], sizes = [1, 64], strides = [1, 1]} : vector<5x64xf32> to vector<1x64xf32>
    %23 = vector.broadcast %22 : vector<1x64xf32> to vector<16x64xf32>
    %24 = arith.addf %21, %23 : vector<16x64xf32>
    %25 = vector.shape_cast %12 : vector<16x64xf32> to vector<2x8x64xf32>
    %26 = arith.truncf %25 : vector<2x8x64xf32> to vector<2x8x64xbf16>
    %27 = vector.shape_cast %18 : vector<16x64xf32> to vector<2x8x64xf32>
    %28 = arith.truncf %27 : vector<2x8x64xf32> to vector<2x8x64xbf16>
    %29 = vector.shape_cast %24 : vector<16x64xf32> to vector<2x8x64xf32>
    %30 = arith.truncf %29 : vector<2x8x64xf32> to vector<2x8x64xbf16>
    %31 = vector.extract_strided_slice %26 {offsets = [0, 0, 0], sizes = [2, 8, 32], strides = [1, 1, 1]} : vector<2x8x64xbf16> to vector<2x8x32xbf16>
    %32 = vector.extract_strided_slice %28 {offsets = [0, 0, 0], sizes = [2, 8, 32], strides = [1, 1, 1]} : vector<2x8x64xbf16> to vector<2x8x32xbf16>
    "tpu.trace_start"() <{level = 10 : i32, message = "bqd,bkd->bqk"}> : () -> ()
    %cst_16 = arith.constant dense<0.000000e+00> : vector<2x8x8xf32>
    %33 = tpu.matmul %31, %32, %cst_16 {dimension_numbers = #tpu.dot_dimension_numbers<[2], [2], [1], [1], [0, 0, 0, 1, 1, 1], [0], [0]>} : vector<2x8x32xbf16>, vector<2x8x32xbf16>, vector<2x8x8xf32> -> vector<2x8x8xf32>
    "tpu.trace_stop"() : () -> ()
    %cst_17 = arith.constant dense<0xFF800000> : vector<2x8xf32>
    %34 = vector.multi_reduction <maximumf>, %33, %cst_17 [2] : vector<2x8x8xf32> to vector<2x8xf32>
    %35 = vector.shape_cast %34 : vector<2x8xf32> to vector<2x8x1xf32>
    %36 = vector.broadcast %35 : vector<2x8x1xf32> to vector<2x8x8xf32>
    %37 = arith.subf %33, %36 : vector<2x8x8xf32>
    %38 = math.exp %37 : vector<2x8x8xf32>
    %cst_18 = arith.constant dense<0.000000e+00> : vector<2x8xf32>
    %39 = vector.multi_reduction <add>, %38, %cst_18 [2] : vector<2x8x8xf32> to vector<2x8xf32>
    %40 = vector.shape_cast %39 : vector<2x8xf32> to vector<2x8x1xf32>
    %41 = tpu.reciprocal %40 {approx = true} : vector<2x8x1xf32> -> vector<2x8x1xf32>
    %42 = vector.broadcast %41 : vector<2x8x1xf32> to vector<2x8x8xf32>
    %43 = arith.mulf %38, %42 : vector<2x8x8xf32>
    %44 = arith.truncf %43 : vector<2x8x8xf32> to vector<2x8x8xbf16>
    %45 = vector.extract_strided_slice %30 {offsets = [0, 0, 0], sizes = [2, 8, 32], strides = [1, 1, 1]} : vector<2x8x64xbf16> to vector<2x8x32xbf16>
    "tpu.trace_start"() <{level = 10 : i32, message = "bqk,bkd->bqd"}> : () -> ()
    %cst_19 = arith.constant dense<0.000000e+00> : vector<2x8x32xf32>
    %46 = tpu.matmul %44, %45, %cst_19 {dimension_numbers = #tpu.dot_dimension_numbers<[2], [1], [1], [2], [0, 0, 0, 1, 1, 2], [0], [0]>} : vector<2x8x8xbf16>, vector<2x8x32xbf16>, vector<2x8x32xf32> -> vector<2x8x32xf32>
    "tpu.trace_stop"() : () -> ()
    %47 = arith.truncf %46 : vector<2x8x32xf32> to vector<2x8x32xbf16>
    %48 = vector.extract_strided_slice %26 {offsets = [0, 0, 32], sizes = [2, 8, 32], strides = [1, 1, 1]} : vector<2x8x64xbf16> to vector<2x8x32xbf16>
    %49 = vector.extract_strided_slice %28 {offsets = [0, 0, 32], sizes = [2, 8, 32], strides = [1, 1, 1]} : vector<2x8x64xbf16> to vector<2x8x32xbf16>
    "tpu.trace_start"() <{level = 10 : i32, message = "bqd,bkd->bqk"}> : () -> ()
    %cst_20 = arith.constant dense<0.000000e+00> : vector<2x8x8xf32>
    %50 = tpu.matmul %48, %49, %cst_20 {dimension_numbers = #tpu.dot_dimension_numbers<[2], [2], [1], [1], [0, 0, 0, 1, 1, 1], [0], [0]>} : vector<2x8x32xbf16>, vector<2x8x32xbf16>, vector<2x8x8xf32> -> vector<2x8x8xf32>
    "tpu.trace_stop"() : () -> ()
    %cst_21 = arith.constant dense<0xFF800000> : vector<2x8xf32>
    %51 = vector.multi_reduction <maximumf>, %50, %cst_21 [2] : vector<2x8x8xf32> to vector<2x8xf32>
    %52 = vector.shape_cast %51 : vector<2x8xf32> to vector<2x8x1xf32>
    %53 = vector.broadcast %52 : vector<2x8x1xf32> to vector<2x8x8xf32>
    %54 = arith.subf %50, %53 : vector<2x8x8xf32>
    %55 = math.exp %54 : vector<2x8x8xf32>
    %cst_22 = arith.constant dense<0.000000e+00> : vector<2x8xf32>
    %56 = vector.multi_reduction <add>, %55, %cst_22 [2] : vector<2x8x8xf32> to vector<2x8xf32>
    %57 = vector.shape_cast %56 : vector<2x8xf32> to vector<2x8x1xf32>
    %58 = tpu.reciprocal %57 {approx = true} : vector<2x8x1xf32> -> vector<2x8x1xf32>
    %59 = vector.broadcast %58 : vector<2x8x1xf32> to vector<2x8x8xf32>
    %60 = arith.mulf %55, %59 : vector<2x8x8xf32>
    %61 = arith.truncf %60 : vector<2x8x8xf32> to vector<2x8x8xbf16>
    %62 = vector.extract_strided_slice %30 {offsets = [0, 0, 32], sizes = [2, 8, 32], strides = [1, 1, 1]} : vector<2x8x64xbf16> to vector<2x8x32xbf16>
    "tpu.trace_start"() <{level = 10 : i32, message = "bqk,bkd->bqd"}> : () -> ()
    %cst_23 = arith.constant dense<0.000000e+00> : vector<2x8x32xf32>
    %63 = tpu.matmul %61, %62, %cst_23 {dimension_numbers = #tpu.dot_dimension_numbers<[2], [1], [1], [2], [0, 0, 0, 1, 1, 2], [0], [0]>} : vector<2x8x8xbf16>, vector<2x8x32xbf16>, vector<2x8x32xf32> -> vector<2x8x32xf32>
    "tpu.trace_stop"() : () -> ()
    %64 = arith.truncf %63 : vector<2x8x32xf32> to vector<2x8x32xbf16>
    %65 = tpu.concatenate %47, %64 in 2 : vector<2x8x32xbf16>, vector<2x8x32xbf16> -> vector<2x8x64xbf16>
    %66 = vector.shape_cast %65 : vector<2x8x64xbf16> to vector<16x64xbf16>
    %c0_24 = arith.constant 0 : index
    %c0_25 = arith.constant 0 : index
    %c0_26 = arith.constant 0 : index
    %67 = vector.load %arg7[%c0_24, %c0_25, %c0_26] : memref<1x64x64xbf16, #tpu.memory_space<vmem>>, vector<1x64x64xbf16>
    %68 = vector.shape_cast %67 : vector<1x64x64xbf16> to vector<64x64xbf16>
    %cst_27 = arith.constant dense<0.000000e+00> : vector<16x64xf32>
    %69 = tpu.matmul %66, %68, %cst_27 {dimension_numbers = #tpu.dot_dimension_numbers<[1], [0], [0], [1], [0, 0, 1, 1], [], []>} : vector<16x64xbf16>, vector<64x64xbf16>, vector<16x64xf32> -> vector<16x64xf32>
    %70 = vector.extract_strided_slice %5 {offsets = [3, 0], sizes = [1, 64], strides = [1, 1]} : vector<5x64xf32> to vector<1x64xf32>
    %71 = vector.broadcast %70 : vector<1x64xf32> to vector<16x64xf32>
    %72 = arith.addf %69, %71 : vector<16x64xf32>
    %c0_28 = arith.constant 0 : index
    %c0_29 = arith.constant 0 : index
    %c0_30 = arith.constant 0 : index
    %73 = vector.load %arg12[%c0_28, %c0_29, %c0_30] : memref<1x4x64xf32, #tpu.memory_space<vmem>>, vector<1x4x64xf32>
    %74 = vector.shape_cast %73 : vector<1x4x64xf32> to vector<4x64xf32>
    %75 = arith.addf %3, %72 : vector<16x64xf32>
    %76 = vector.extract_strided_slice %74 {offsets = [0, 0], sizes = [1, 64], strides = [1, 1]} : vector<4x64xf32> to vector<1x64xf32>
    %77 = vector.extract_strided_slice %74 {offsets = [1, 0], sizes = [1, 64], strides = [1, 1]} : vector<4x64xf32> to vector<1x64xf32>
    %cst_31 = arith.constant dense<0.000000e+00> : vector<16xf32>
    %78 = vector.multi_reduction <add>, %75, %cst_31 [1] : vector<16x64xf32> to vector<16xf32>
    %79 = vector.shape_cast %78 : vector<16xf32> to vector<16x1xf32>
    %cst_32 = arith.constant 6.400000e+01 : f32
    %80 = vector.broadcast %cst_32 : f32 to vector<16x1xf32>
    %81 = arith.divf %79, %80 : vector<16x1xf32>
    %82 = vector.broadcast %81 : vector<16x1xf32> to vector<16x64xf32>
    %83 = arith.subf %75, %82 : vector<16x64xf32>
    %84 = arith.mulf %83, %83 : vector<16x64xf32>
    %cst_33 = arith.constant dense<0.000000e+00> : vector<16xf32>
    %85 = vector.multi_reduction <add>, %84, %cst_33 [1] : vector<16x64xf32> to vector<16xf32>
    %86 = vector.shape_cast %85 : vector<16xf32> to vector<16x1xf32>
    %cst_34 = arith.constant 6.400000e+01 : f32
    %87 = vector.broadcast %cst_34 : f32 to vector<16x1xf32>
    %88 = arith.divf %86, %87 : vector<16x1xf32>
    %89 = vector.broadcast %81 : vector<16x1xf32> to vector<16x64xf32>
    %90 = arith.subf %75, %89 : vector<16x64xf32>
    %cst_35 = arith.constant 9.99999974E-6 : f32
    %91 = vector.broadcast %cst_35 : f32 to vector<16x1xf32>
    %92 = arith.addf %88, %91 : vector<16x1xf32>
    %93 = math.rsqrt %92 : vector<16x1xf32>
    %94 = vector.broadcast %93 : vector<16x1xf32> to vector<16x64xf32>
    %95 = arith.mulf %90, %94 : vector<16x64xf32>
    %96 = vector.broadcast %76 : vector<1x64xf32> to vector<16x64xf32>
    %97 = arith.mulf %95, %96 : vector<16x64xf32>
    %98 = vector.broadcast %77 : vector<1x64xf32> to vector<16x64xf32>
    %99 = arith.addf %97, %98 : vector<16x64xf32>
    %100 = arith.truncf %99 : vector<16x64xf32> to vector<16x64xbf16>
    %c0_36 = arith.constant 0 : index
    %c0_37 = arith.constant 0 : index
    %c0_38 = arith.constant 0 : index
    %101 = vector.load %arg8[%c0_36, %c0_37, %c0_38] : memref<1x64x128xbf16, #tpu.memory_space<vmem>>, vector<1x64x128xbf16>
    %102 = vector.shape_cast %101 : vector<1x64x128xbf16> to vector<64x128xbf16>
    %cst_39 = arith.constant dense<0.000000e+00> : vector<16x128xf32>
    %103 = tpu.matmul %100, %102, %cst_39 {dimension_numbers = #tpu.dot_dimension_numbers<[1], [0], [0], [1], [0, 0, 1, 1], [], []>} : vector<16x64xbf16>, vector<64x128xbf16>, vector<16x128xf32> -> vector<16x128xf32>
    %c0_40 = arith.constant 0 : index
    %c0_41 = arith.constant 0 : index
    %c0_42 = arith.constant 0 : index
    %104 = vector.load %arg11[%c0_40, %c0_41, %c0_42] : memref<1x1x128xf32, #tpu.memory_space<vmem>>, vector<1x1x128xf32>
    %105 = vector.shape_cast %104 : vector<1x1x128xf32> to vector<1x128xf32>
    %106 = vector.broadcast %105 : vector<1x128xf32> to vector<16x128xf32>
    %107 = arith.addf %103, %106 : vector<16x128xf32>
    %cst_43 = arith.constant 0.000000e+00 : f32
    %108 = vector.broadcast %cst_43 : f32 to vector<16x128xf32>
    %109 = arith.maximumf %107, %108 : vector<16x128xf32>
    %110 = arith.truncf %109 : vector<16x128xf32> to vector<16x128xbf16>
    %c0_44 = arith.constant 0 : index
    %c0_45 = arith.constant 0 : index
    %c0_46 = arith.constant 0 : index
    %111 = vector.load %arg9[%c0_44, %c0_45, %c0_46] : memref<1x128x64xbf16, #tpu.memory_space<vmem>>, vector<1x128x64xbf16>
    %112 = vector.shape_cast %111 : vector<1x128x64xbf16> to vector<128x64xbf16>
    %cst_47 = arith.constant dense<0.000000e+00> : vector<16x64xf32>
    %113 = tpu.matmul %110, %112, %cst_47 {dimension_numbers = #tpu.dot_dimension_numbers<[1], [0], [0], [1], [0, 0, 1, 1], [], []>} : vector<16x128xbf16>, vector<128x64xbf16>, vector<16x64xf32> -> vector<16x64xf32>
    %114 = vector.extract_strided_slice %5 {offsets = [4, 0], sizes = [1, 64], strides = [1, 1]} : vector<5x64xf32> to vector<1x64xf32>
    %115 = vector.broadcast %114 : vector<1x64xf32> to vector<16x64xf32>
    %116 = arith.addf %113, %115 : vector<16x64xf32>
    %117 = arith.addf %99, %116 : vector<16x64xf32>
    %118 = vector.extract_strided_slice %74 {offsets = [2, 0], sizes = [1, 64], strides = [1, 1]} : vector<4x64xf32> to vector<1x64xf32>
    %119 = vector.extract_strided_slice %74 {offsets = [3, 0], sizes = [1, 64], strides = [1, 1]} : vector<4x64xf32> to vector<1x64xf32>
    %cst_48 = arith.constant dense<0.000000e+00> : vector<16xf32>
    %120 = vector.multi_reduction <add>, %117, %cst_48 [1] : vector<16x64xf32> to vector<16xf32>
    %121 = vector.shape_cast %120 : vector<16xf32> to vector<16x1xf32>
    %cst_49 = arith.constant 6.400000e+01 : f32
    %122 = vector.broadcast %cst_49 : f32 to vector<16x1xf32>
    %123 = arith.divf %121, %122 : vector<16x1xf32>
    %124 = vector.broadcast %123 : vector<16x1xf32> to vector<16x64xf32>
    %125 = arith.subf %117, %124 : vector<16x64xf32>
    %126 = arith.mulf %125, %125 : vector<16x64xf32>
    %cst_50 = arith.constant dense<0.000000e+00> : vector<16xf32>
    %127 = vector.multi_reduction <add>, %126, %cst_50 [1] : vector<16x64xf32> to vector<16xf32>
    %128 = vector.shape_cast %127 : vector<16xf32> to vector<16x1xf32>
    %cst_51 = arith.constant 6.400000e+01 : f32
    %129 = vector.broadcast %cst_51 : f32 to vector<16x1xf32>
    %130 = arith.divf %128, %129 : vector<16x1xf32>
    %131 = vector.broadcast %123 : vector<16x1xf32> to vector<16x64xf32>
    %132 = arith.subf %117, %131 : vector<16x64xf32>
    %cst_52 = arith.constant 9.99999974E-6 : f32
    %133 = vector.broadcast %cst_52 : f32 to vector<16x1xf32>
    %134 = arith.addf %130, %133 : vector<16x1xf32>
    %135 = math.rsqrt %134 : vector<16x1xf32>
    %136 = vector.broadcast %135 : vector<16x1xf32> to vector<16x64xf32>
    %137 = arith.mulf %132, %136 : vector<16x64xf32>
    %138 = vector.broadcast %118 : vector<1x64xf32> to vector<16x64xf32>
    %139 = arith.mulf %137, %138 : vector<16x64xf32>
    %140 = vector.broadcast %119 : vector<1x64xf32> to vector<16x64xf32>
    %141 = arith.addf %139, %140 : vector<16x64xf32>
    %c0_53 = arith.constant 0 : index
    %c0_54 = arith.constant 0 : index
    %142 = vector.load %arg14[%c0_53, %c0_54] : memref<16x64xf32, #tpu.memory_space<vmem>>, vector<16x64xf32>
    tpu.vector_store %arg14[%c0_53, %c0_54], %141 {strides = array<i32>} : memref<16x64xf32, #tpu.memory_space<vmem>>, vector<16x64xf32>,
    %c1_i32 = arith.constant 1 : i32
    %143 = arith.cmpi eq, %arg1, %c1_i32 : i32
    %144 = arith.extui %143 : i1 to i32
    %c0_i32_55 = arith.constant 0 : i32
    %145 = arith.cmpi ne, %144, %c0_i32_55 : i32
    scf.if %145 {
      %c0_56 = arith.constant 0 : index
      %c0_57 = arith.constant 0 : index
      %146 = vector.load %arg13[%c0_56, %c0_57] : memref<16x64xf32, #tpu.memory_space<vmem>>, vector<16x64xf32>
      tpu.vector_store %arg13[%c0_56, %c0_57], %141 {strides = array<i32>} : memref<16x64xf32, #tpu.memory_space<vmem>>, vector<16x64xf32>,
    } else {
    }
    return
  }
  func.func @transform_0(%arg0: i32, %arg1: i32) -> (i32, i32) {
    %c0_i32 = arith.constant 0 : i32
    %c0_i32_0 = arith.constant 0 : i32
    return %arg0, %c0_i32 : i32, i32
  }
  func.func @transform_1(%arg0: i32, %arg1: i32) -> (i32, i32) {
    %c0_i32 = arith.constant 0 : i32
    %c0_i32_0 = arith.constant 0 : i32
    %c0_i32_1 = arith.constant 0 : i32
    return %c0_i32, %c0_i32_0 : i32, i32
  }
  func.func @transform_2(%arg0: i32, %arg1: i32) -> (i32, i32, i32) {
    %c0_i32 = arith.constant 0 : i32
    %c0_i32_0 = arith.constant 0 : i32
    %c0_i32_1 = arith.constant 0 : i32
    return %arg1, %c0_i32, %c0_i32_0 : i32, i32, i32
  }
  func.func @transform_3(%arg0: i32, %arg1: i32) -> (i32, i32, i32) {
    %c0_i32 = arith.constant 0 : i32
    %c0_i32_0 = arith.constant 0 : i32
    %c0_i32_1 = arith.constant 0 : i32
    return %arg1, %c0_i32, %c0_i32_0 : i32, i32, i32
  }
  func.func @transform_4(%arg0: i32, %arg1: i32) -> (i32, i32, i32) {
    %c0_i32 = arith.constant 0 : i32
    %c0_i32_0 = arith.constant 0 : i32
    %c0_i32_1 = arith.constant 0 : i32
    return %arg1, %c0_i32, %c0_i32_0 : i32, i32, i32
  }
  func.func @transform_5(%arg0: i32, %arg1: i32) -> (i32, i32, i32) {
    %c0_i32 = arith.constant 0 : i32
    %c0_i32_0 = arith.constant 0 : i32
    %c0_i32_1 = arith.constant 0 : i32
    return %arg1, %c0_i32, %c0_i32_0 : i32, i32, i32
  }
  func.func @transform_6(%arg0: i32, %arg1: i32) -> (i32, i32, i32) {
    %c0_i32 = arith.constant 0 : i32
    %c0_i32_0 = arith.constant 0 : i32
    %c0_i32_1 = arith.constant 0 : i32
    return %arg1, %c0_i32, %c0_i32_0 : i32, i32, i32
  }
  func.func @transform_7(%arg0: i32, %arg1: i32) -> (i32, i32, i32) {
    %c0_i32 = arith.constant 0 : i32
    %c0_i32_0 = arith.constant 0 : i32
    %c0_i32_1 = arith.constant 0 : i32
    return %arg1, %c0_i32, %c0_i32_0 : i32, i32, i32
  }
  func.func @transform_8(%arg0: i32, %arg1: i32) -> (i32, i32, i32) {
    %c0_i32 = arith.constant 0 : i32
    %c0_i32_0 = arith.constant 0 : i32
    %c0_i32_1 = arith.constant 0 : i32
    return %arg1, %c0_i32, %c0_i32_0 : i32, i32, i32
  }
  func.func @transform_9(%arg0: i32, %arg1: i32) -> (i32, i32, i32) {
    %c0_i32 = arith.constant 0 : i32
    %c0_i32_0 = arith.constant 0 : i32
    %c0_i32_1 = arith.constant 0 : i32
    return %arg1, %c0_i32, %c0_i32_0 : i32, i32, i32
  }
  func.func @transform_10(%arg0: i32, %arg1: i32) -> (i32, i32, i32) {
    %c0_i32 = arith.constant 0 : i32
    %c0_i32_0 = arith.constant 0 : i32
    %c0_i32_1 = arith.constant 0 : i32
    return %arg1, %c0_i32, %c0_i32_0 : i32, i32, i32
  }
  func.func @transform_11(%arg0: i32, %arg1: i32) -> (i32, i32) {
    %c0_i32 = arith.constant 0 : i32
    %c0_i32_0 = arith.constant 0 : i32
    return %arg0, %c0_i32 : i32, i32
  }
}

</mosaic_0001>

<bundles_post_ra>
// kernel: tpu_custom_call.1
= control target key start
LH: loop header
LB: loop body
LE: loop exit
PB: predicated region body
PF: predicated region fallthrough
CT: control target
= control target key end

     0   :  { %s3007_s0 = inlined_call_operand.vmem [shape: f32[16,64], index: 0, kind: input, shape index: {}]   ;;  %s3008_s1 = inlined_call_operand.vmem [shape: f32[2,64], index: 1, kind: input, shape index: {}]   ;;  %s3009_s2 = inlined_call_operand.vmem [shape: bf16[2,64,64], index: 2, kind: input, shape index: {}]   ;;  %s3010_s3 = inlined_call_operand.vmem [shape: bf16[2,64,64], index: 3, kind: input, shape index: {}]   ;;  %s3011_s4 = inlined_call_operand.vmem [shape: bf16[2,64,64], index: 4, kind: input, shape index: {}]   ;;  %s3012_s5 = inlined_call_operand.hbm [shape: bf16[2,64,64], index: 5, kind: input, shape index: {}]   ;;  %s3013_s6 = inlined_call_operand.hbm [shape: bf16[2,64,128], index: 6, kind: input, shape index: {}]   ;;  %s3014_s7 = inlined_call_operand.vmem [shape: bf16[2,128,64], index: 7, kind: input, shape index: {}]   ;;  %s3015_s8 = inlined_call_operand.vmem [shape: f32[2,5,64], index: 8, kind: input, shape index: {}]   ;;  %s3016_s9 = inlined_call_operand.vmem [shape: f32[2,1,128], index: 9, kind: input, shape index: {}]   ;;  %s3017_s10 = inlined_call_operand.vmem [shape: f32[2,4,64], index: 10, kind: input, shape index: {}]   ;;  %s3018_s11 = inlined_call_operand.hbm [shape: f32[16,64], index: 11, kind: output, shape index: {}]  }
   0x1   :  { %3029 = sst [smem:[#allocation17_spill]] %s3009_s2 }
   0x2   :  { %3030 = sst [smem:[#allocation18_spill]] %s3010_s3 }
   0x3   :  { %3031 = sst [smem:[#allocation19_spill]] %s3012_s5 }
   0x4   :  { %3032 = sst [smem:[#allocation20_spill]] %s3013_s6 }
   0x5   :  { %3033 = sst [smem:[#allocation21_spill]] %s3018_s11 }
   0x6   :  { %16 = vsyncpa [#allocation4], 0 }
   0x7   :  { %18 = vsyncpa [#allocation4 + $0x1], 0 }
   0x8   :  { %19 = vsyncpa [#allocation7], 0 }
   0x9   :  { %21 = vsyncpa [#allocation7 + $0x1], 0 }
   0xa   :  { %22 = vsyncpa [#allocation5], 0  ;;  %s2519_s17 = smov 0   ;;  %s2521_s18 = smov 0  }
   0xb   :  { %s2523_s19 = smov 0   ;;  %s2525_s20 = smov 0  }
   0xc   :  { %s2527_s21 = smov 0   ;;  %s2529_s22 = smov 0  }
   0xd LB: > { %3034 = sst [smem:[#allocation12_spill]] %s2430_s18  ;;  %s3019_s23 = sadd.s32 4294967295, %s2446_s22   ;;  %s2446_s22 = sphi %s2529_s22, %s28_s22   ;;  %s2442_s21 = sphi %s2527_s21, %s3059_s21   ;;  %s2438_s20 = sphi %s2525_s20, %s3058_s20   ;;  %s2434_s19 = sphi %s2523_s19, %s3057_s19   ;;  %s2430_s18 = sphi %s2521_s18, %s3056_s18   ;;  %s2426_s17 = sphi %s2519_s17, %s3055_s17  }
   0xe   : > { %3035 = sst [smem:[#allocation13_spill]] %s2434_s19  ;;  %s37_s24 = sadd.s32 1, %s2442_s21 }
   0xf   : > { %3036 = sst [smem:[#allocation14_spill]] %s2442_s21  ;;  %p38_p0 = scmp.ge.s32.totalorder %s37_s24, 2 }
  0x10   : > { %s172_s25 = sadd.s32 1, %s2434_s19  ;;  %p179_p1 = scmp.ne.s32.totalorder %s2434_s19, %s2430_s18 }
  0x11   : > { %p180_p2 = scmp.eq.s32.totalorder %s2446_s22, 0  ;;  %s3061_s24 = smov (%p38_p0, %s37_s24), 0 }
  0x12   : > { %3037 = sst [smem:[#allocation15_spill]] %s3061_s24  ;;  %p185_p4 = scmp.ne.s32.totalorder %s2430_s18, %s2426_s17 }
  0x13   : > { %p2555_p3 = por %p180_p2, %p179_p1  ;;  %s169_s27 = ssub.s32 %s2442_s21, %s3061_s24 }
  0x14   : > { %p186_p5 = scmp.eq.s32.totalorder %s3019_s23, 0  ;;  %p170_p6 = scmp.eq.s32.totalorder %s169_s27, 0 }
  0x15   : > { %p2186_p8 = scmp.lt.s32.totalorder %s2446_s22, 2  ;;  %s2573_s30 = sand.u32 1, %s2434_s19  }
  0x16   : > { %p2564_p7 = por %p186_p5, %p185_p4  ;;  %s3021_s12 = sshll.u32 %s2442_s21, 9 }
  0x17   : > { %s2570_s29 = scalar_select %p170_p6, %s2434_s19, %s172_s25  }
  0x18   : > { %s3039_s28 = scalar_select %p2564_p7, 1, 0 }
  0x19   : > { %3040 = sst [smem:[#allocation16_spill]] %s2570_s29  ;;  %s3020_s13 = sshll.u32 %s2573_s30, 5 }
  0x1a   : > { %s3041_s5 = sld [smem:[#allocation19_spill]]  ;;  %s405_s17 = scalar_lea.vmem [#allocation3], %s3020_s13 }
  0x1b   : > { %s412_s25 = sshll.u32 %s405_s17, 4  ;;  %p2588_p9 = pnand %p2186_p8, %p2555_p3  ;;  %s2592_s25 = int_to_ptr.vmem [resolvable:$true] %s412_s25 }
  0x1d   : > { %p2304_p11 = pneg %p2588_p9 }
  0x20   : > { %s2582_s16 = scalar_lea.hbm %s3041_s5, %s3021_s12  ;;  %s2307_s26 = scalar_lea.hbm %s3041_s5, 1024 }
  0x21   : > { %s2302_s14 = scalar_lea.hbm %s2582_s16, 512  ;;  %p2308_p0 = scmp.lt.u32.totalorder %s2582_s16, %s3041_s5 }
  0x22   : > { %p2303_p10 = scmp.ne.s32.totalorder %s2582_s16, %s2302_s14  ;;  %p2309_p1 = scmp.lt.u32.totalorder %s2307_s26, %s2302_s14 }
  0x23   : > { %p2311_p3 = scmp.lt.u32.totalorder %s2302_s14, %s2582_s16 }
  0x24   : > { %p2305_p12 = pnand %p2304_p11, %p2303_p10  ;;  %p2310_p2 = por %p2309_p1, %p2308_p0 }
  0x26   : > { %p2306_p13 = pneg %p2305_p12  ;;  %p2312_p4 = por %p2311_p3, %p2310_p2 }
  0x28   : > { %p2313_p5 = pnand %p2312_p4, %p2306_p13 }
  0x2a   : > { %2316 = shalt.err (!%p2313_p5)
}
  0x2b   : > { %s2317_s23 = scalar_lea.vmem %s2592_s25, 512  ;;  %s2448_s15 = smov [#allocation3]  }
  0x2c   : > { %p2318_p6 = scmp.ne.s32.totalorder %s2592_s25, %s2317_s23  ;;  %s2322_s17 = sshll.u32 %s2448_s15, 4  ;;  %s2323_s17 = int_to_ptr.vmem [resolvable:$false] %s2322_s17 }
  0x2d   : > { %s2324_s12 = scalar_lea.vmem %s2323_s17, 1024  ;;  %p2325_p12 = scmp.lt.s32.totalorder %s2592_s25, %s2323_s17 }
  0x2e   : > { %p2320_p8 = pnand %p2318_p6, %p2304_p11  ;;  %p2326_p0 = scmp.lt.s32.totalorder %s2324_s12, %s2317_s23 }
  0x30   : > { %p2321_p10 = pneg %p2320_p8  ;;  %p2327_p1 = por %p2326_p0, %p2325_p12 }
  0x32   : > { %p2328_p2 = pnand %p2327_p1, %p2321_p10 }
  0x34   : > { %2331 = shalt.err (!%p2328_p2)
}
  0x35   : > { %s3024_s13 = smov 64   ;;  %s2450_s14 = smov 4  }
  0x36   : > { %s3043_s23 = scalar_lea.sflag [#allocation4], %s2573_s30  ;;  %p1923_p13 = scmp.ge.s32.totalorder %s2446_s22, 1 }
  0x37   : > { %2182 = dma.hbm_to_vmem [thread:$0]  (!%p2588_p9), %s2582_s16, 512, %s2592_s25, %s3043_s23, %s3024_s13, %s3024_s13, %s2450_s14  }
  0x38   : > { %p469_p3 = scmp.lt.s32.totalorder %s2446_s22, 3  ;;  %s3045_s15 = sshll.u32 %s2442_s21, 9 }
  0x39   : > { %s3046_s6 = sld [smem:[#allocation20_spill]]  ;;  %s3047_s24 = sshll.u32 %s2573_s30, 5 }
  0x3a   : > { %p2627_p4 = pnand %p1923_p13, %p469_p3  ;;  %s426_s29 = scalar_lea.vmem [#allocation6], %s3047_s24 }
  0x3b   : > { %s433_s19 = sshll.u32 %s426_s29, 4  ;;  %s423_s16 = scalar_lea.sflag [#allocation7], %s2573_s30  ;;  %s2640_s19 = int_to_ptr.vmem [resolvable:$true] %s433_s19 }
  0x3f   : > { %s2636_s5 = scalar_lea.hbm %s3046_s6, %s3045_s15  ;;  %s2337_s15 = scalar_lea.hbm %s3046_s6, 1024 }
  0x40   : > { %s2332_s25 = scalar_lea.hbm %s2636_s5, 512  ;;  %p2338_p10 = scmp.lt.u32.totalorder %s2636_s5, %s3046_s6 }
  0x41   : > { %p2333_p5 = scmp.ne.s32.totalorder %s2636_s5, %s2332_s25  ;;  %p2339_p12 = scmp.lt.u32.totalorder %s2337_s15, %s2332_s25 }
  0x42   : > { %p2341_p1 = scmp.lt.u32.totalorder %s2332_s25, %s2636_s5 }
  0x43   : > { %p2335_p6 = pnand %p2333_p5, %p2304_p11  ;;  %p2340_p0 = por %p2339_p12, %p2338_p10 }
  0x45   : > { %p2336_p8 = pneg %p2335_p6  ;;  %p2342_p2 = por %p2341_p1, %p2340_p0 }
  0x47   : > { %p2343_p13 = pnand %p2342_p2, %p2336_p8 }
  0x49   : > { %2346 = shalt.err (!%p2343_p13)
}
  0x4a   : > { %s2347_s24 = scalar_lea.vmem %s2640_s19, 512  ;;  %s2451_s29 = smov [#allocation6]  }
  0x4b   : > { %p2348_p3 = scmp.ne.s32.totalorder %s2640_s19, %s2347_s24  ;;  %s2352_s23 = sshll.u32 %s2451_s29, 4  ;;  %s2353_s23 = int_to_ptr.vmem [resolvable:$false] %s2352_s23 }
  0x4c   : > { %s2354_s13 = scalar_lea.vmem %s2353_s23, 1024  ;;  %p2355_p7 = scmp.lt.s32.totalorder %s2640_s19, %s2353_s23 }
  0x4d   : > { %p2350_p5 = pnand %p2348_p3, %p2304_p11  ;;  %p2356_p10 = scmp.lt.s32.totalorder %s2354_s13, %s2347_s24 }
  0x4f   : > { %p2351_p6 = pneg %p2350_p5  ;;  %p2357_p12 = por %p2356_p10, %p2355_p7 }
  0x51   : > { %p2358_p0 = pnand %p2357_p12, %p2351_p6 }
  0x53   : > { %2361 = shalt.err (!%p2358_p0)
}
  0x54   : > { %s3048_s25 = smov 64   ;;  %473 = sbr.rel (%p2627_p4) target bundleno = 3396 (0xd44), region = 64 }
  0x55   : > { %2185 = dma.hbm_to_vmem [thread:$0]  (!%p2588_p9), %s2636_s5, 512, %s2640_s19, %s423_s16, %s3048_s25, %s3048_s25, %s2450_s14  }
  0x56   : > { %s475_s17 = sand.u32 (!%p2627_p4), 1, %s2430_s18   ;;  %p3049_p7 = scmp.ne.s32.totalorder (!%p2627_p4), %s3039_s28, 0 }
  0x57   : > { %s1924_s15 = sshll.u32 (!%p2627_p4), %s475_s17, 5  ;;  %s476_s12 = scalar_lea.sflag (!%p2627_p4), [#allocation4], %s475_s17 }
  0x58   : > { %s2674_s24 = scalar_lea.vmem (!%p2627_p4), [#allocation3], %s1924_s15 }
  0x5b   : > { %2413 = dma.done.wait (%p3049_p7), %s476_s12, 512  }
  0x5c   : > { %2415 = vsyncadd (%p3049_p7), %s476_s12, 4294966784  ;;  %s485_s30 = scalar_lea.sflag [#allocation7], %s475_s17  ;;  %s2680_s27 = scalar_lea.vmem [#allocation6], %s1924_s15 }
  0x5d   : > { %2417 = dma.done.wait (%p3049_p7), %s485_s30, 512  }
  0x5e   : > { %2419 = vsyncadd (%p3049_p7), %s485_s30, 4294966784  ;;  %p569_p9 = scmp.lt.s32.totalorder %s2438_s20, 1  ;;  %s3050_s2 = sld [smem:[#allocation17_spill]] }
  0x5f   : > { %s3051_s3 = sld [smem:[#allocation18_spill]]  ;;  %p1936_p11 = scmp.ne.s32.totalorder %s2438_s20, 0 }
  0x60   : > { %s2688_s5 = scalar_select %p569_p9, %s2438_s20, 1 }
  0x61   : > { %605 = sbr.rel (%p1936_p11) target bundleno = 416 (0x1a0), region = 76  ;;  %v606_v0 = vld [vmem:[%s3007_s0] sm:$0xff] (!%p1936_p11)  ;;  %vm610_vm0 = vcmask (!%p1936_p11), 523264   ;;  %v607_v1 = vld [vmem:[%s3007_s0 + $0x8] sm:$0xff] (!%p1936_p11) }
  0x62   : > { %s1989_s19 = sshll.u32 %s2688_s5, 5  ;;  %s1992_s14 = sshll.u32 %s2688_s5, 6  ;;  %v611_v2 = vsel (!%p1936_p11), %vm610_vm0, %v606_v0, 0.0  ;;  %v614_v3 = vsel (!%p1936_p11), %vm610_vm0, %v607_v1, 0.0  ;;  %v1937_v21 = vld [vmem:[%s3008_s1] ss:$0 sm:$0xff] (!%p1936_p11) }
  0x63   : > { %s2705_s15 = scalar_lea.vmem %s3011_s4, %s1989_s19  ;;  %s2710_s6 = scalar_lea.vmem %s3014_s7, %s1992_s14  ;;  %612 = vadd.xlane.f32.xlu0 (!%p1936_p11), %v611_v2  ;;  %v1938_v23 = vld [vmem:[%s3008_s1 + $0x1] ss:$0 sm:$0xff] (!%p1936_p11) }
  0x64   : > { %s2695_s29 = scalar_lea.vmem %s3050_s2, %s1989_s19  ;;  %s1934_s21 = sshll.u32 %s2688_s5, 3 }
  0x65   : > { %s2700_s13 = scalar_lea.vmem %s3051_s3, %s1989_s19  ;;  %s595_s16 = scalar_lea.vmem %s3016_s9, %s2688_s5 }
  0x66   : > { %s2720_s23 = scalar_lea.vmem %s3015_s8, %s1934_s21  ;;  %s1935_s28 = sshll.u32 %s2688_s5, 2 }
  0x67   : > { %s2726_s19 = scalar_lea.vmem %s3017_s10, %s1935_s28  ;;  %615 = vadd.xlane.f32.xlu0 (!%p1936_p11), %v614_v3 }
  0xf0   : > { %v613_v4 = vpop.xlane.xlu0 %612 }
  0xf1   : > { %v618_v5 = vmul.f32 0.015625, %v613_v4 }
  0xf3   : > { %v620_v6 = vsub.f32 %v606_v0, %v618_v5 }
  0xf4   : > { %v616_v7 = vpop.xlane.xlu0 %615 }
  0xf5   : > { %v619_v8 = vmul.f32 0.015625, %v616_v7  ;;  %v622_v9 = vmul.f32 %v620_v6, %v620_v6 }
  0xf7   : > { %v621_v10 = vsub.f32 %v607_v1, %v619_v8  ;;  %v624_v11 = vsel %vm610_vm0, %v622_v9, 0.0 }
  0xf8   : > { %625 = vadd.xlane.f32.xlu1 %v624_v11 }
  0xf9   : > { %v623_v12 = vmul.f32 %v621_v10, %v621_v10 }
  0xfb   : > { %v627_v13 = vsel %vm610_vm0, %v623_v12, 0.0 }
  0xfc   : > { %628 = vadd.xlane.f32.xlu1 %v627_v13 }
 0x185   : > { %v626_v14 = vpop.xlane.xlu1 %625 }
 0x186   : > { %v630_v15 = vmul.f32 0.015625, %v626_v14 }
 0x188   : > { %v632_v16 = vadd.f32 1e-05, %v630_v15 }
 0x189   : > { %v629_v17 = vpop.xlane.xlu1 %628 }
 0x18a   : > { %2246 = vrsqrt.f32 %v632_v16  ;;  %v631_v18 = vmul.f32 0.015625, %v629_v17 }
 0x18c   : > { %v633_v19 = vadd.f32 1e-05, %v631_v18 }
 0x18e   : > { %2248 = vrsqrt.f32 %v633_v19 }
 0x194   : > { %v2247_v20 = vpop.eup %2246 }
 0x195   : > { %v636_v22 = vmul.f32 %v2247_v20, %v620_v6 }
 0x197   : > { %v642_v24 = vmul.f32 %v1937_v21, %v636_v22 }
 0x198   : > { %v2249_v25 = vpop.eup %2248 }
 0x199   : > { %v648_v26 = vadd.f32 %v1938_v23, %v642_v24  ;;  %v637_v27 = vmul.f32 %v2249_v25, %v621_v10 }
 0x19b   : > { %650 = vst.msk [vmem:[#allocation2] sm:$0xff] %vm610_vm0, %v648_v26  ;;  %v643_v28 = vmul.f32 %v1937_v21, %v637_v27 }
 0x19d   : > { %v649_v29 = vadd.f32 %v1938_v23, %v643_v28 }
 0x19f   : > { %651 = vst.msk [vmem:[#allocation2 + $0x8] sm:$0xff] %vm610_vm0, %v649_v29 }
 0x1a0 PF: > { %v2250_v30 = vld [vmem:[%s2695_s29] sm:$0xff]   ;;  %v2452_v31 = vmov 0.0   ;;  %v2251_v32 = vld [vmem:[%s2695_s29 + $0x8] sm:$0xff]   ;;  %vm2453_vm1 = vmmov 0   ;;  %v2252_v33 = vld [vmem:[%s2695_s29 + $0x10] sm:$0xff]   ;;  %vm692_vm2 = vcmask 523264   ;;  %v664_v45 = vlaneseq }
 0x1a1   : > { %2043 = vmatprep.subr.bf16.mxu1 %v2452_v31  ;;  %2067 = vmatprep.subr.bf16.mxu0 %v2452_v31  ;;  %v2253_v34 = vld [vmem:[%s2695_s29 + $0x18] sm:$0xff]   ;;  %v2254_v37 = vld [vmem:[%s2700_s13] sm:$0xff]   ;;  %v2255_v39 = vld [vmem:[%s2700_s13 + $0x8] sm:$0xff]   ;;  %vm897_vm3 = vcmask 261120   ;;  %s2454_s29 = smov 96   ;;  %vm990_vm4 = vcmask 64512  }
 0x1a2   : > { %2044 = vmatpush3.bf16.msra.mxu1 %v2250_v30  ;;  %2051 = vmatprep.mubr.msk.bf16.mxu1 %vm2453_vm1, %v2452_v31  ;;  %v2759_v35 = vld [vmem:[#allocation2] sm:$0xff]  ;;  %v2256_v40 = vld [vmem:[%s2700_s13 + $0x10] sm:$0xff]   ;;  %v2257_v41 = vld [vmem:[%s2700_s13 + $0x18] sm:$0xff]   ;;  %v2785_v47 = vshrl.u32 %v664_v45, 7  ;;  %vm1018_vm5 = vcmask 1043456   ;;  %s2455_s13 = smov 32  }
 0x1a3   : > { %2045 = vmatprep.subr.bf16.mxu1 %v2452_v31  ;;  %2075 = vmatprep.mubr.msk.bf16.mxu0 %vm2453_vm1, %v2452_v31  ;;  %v2789_v49 = vld [vmem:[%s2720_s23] sm:$0x1f]  ;;  %v2259_v4 = vld [vmem:[%s2705_s15 + $0x8] sm:$0xff]   ;;  %v2260_v5 = vld [vmem:[%s2705_s15 + $0x10] sm:$0xff]   ;;  %p1982_p4 = scmp.ne.s32.totalorder %s2438_s20, 1 }
 0x1a4   : > { %v747_v48 = vsub.s32 1, %v2785_v47  ;;  %v666_v51 = vsub.s32 0, %v2785_v47  ;;  %v2258_v3 = vld [vmem:[%s2705_s15] sm:$0xff]   ;;  %v2261_v6 = vld [vmem:[%s2705_s15 + $0x18] sm:$0xff]   ;;  %v824_v27 = vsub.s32 2, %v2785_v47 }
 0x1a5   : > { %2068 = vmatpush3.bf16.msra.mxu0 %v2258_v3 }
 0x1a6   : > { %2046 = vmatpush3.bf16.msra.mxu1 %v2251_v32  ;;  %v2761_v36 = vld [vmem:[#allocation2 + $0x8] sm:$0xff]  ;;  %v748_v50 = vrot.slane %v2789_v49, %v747_v48  ;;  %v667_v56 = vrot.slane %v2789_v49, %v666_v51  ;;  %2069 = vmatprep.subr.bf16.mxu0 %v2452_v31  ;;  %v825_v28 = vrot.slane %v2789_v49, %v824_v27 }
 0x1a7   : > { %2047 = vmatprep.subr.bf16.mxu1 %v2452_v31  ;;  %v2767_v38 = vpack.c.bf16 %v2761_v36, %v2759_v35 }
 0x1a9   : > { %2070 = vmatpush3.bf16.msra.mxu0 %v2259_v4 }
 0x1aa   : > { %2048 = vmatpush3.bf16.msra.mxu1 %v2252_v33  ;;  %2071 = vmatprep.subr.bf16.mxu0 %v2452_v31 }
 0x1ab   : > { %2049 = vmatprep.subr.bf16.mxu1 %v2452_v31 }
 0x1ad   : > { %2072 = vmatpush3.bf16.msra.mxu0 %v2260_v5 }
 0x1ae   : > { %2050 = vmatpush3.bf16.msra.mxu1 %v2253_v34  ;;  %2073 = vmatprep.subr.bf16.mxu0 %v2452_v31 }
 0x1af   : > { %2055 = vmatprep.subr.bf16.mxu1 %v2452_v31 }
 0x1b1   : > { %2052 = vmatmul.mubr.msk.bf16.vlgmr.msra.gmra.mrb[0].mxu1 %vm692_vm2, %v2767_v38  ;;  %2074 = vmatpush3.bf16.msra.mxu0 %v2261_v6 }
 0x1b2   : > { %2056 = vmatpush3.bf16.msra.mxu1 %v2254_v37  ;;  %2063 = vmatprep.mubr.msk.bf16.mxu1 %vm2453_vm1, %v2452_v31 }
 0x1b3   : > { %2057 = vmatprep.subr.bf16.mxu1 %v2452_v31  ;;  %2091 = vmatprep.subr.bf16.mxu0 %v2452_v31 }
 0x1b4   : > { %2076 = vmatmul.mubr.msk.bf16.vlgmr.msra.gmra.mrb[0].mxu0 %vm692_vm2, %v2767_v38 }
 0x1b5   : > { %2093 = vmatprep.mubr.msk.bf16.mxu0 %vm2453_vm1, %v2452_v31 }
 0x1b6   : > { %2058 = vmatpush3.bf16.msra.mxu1 %v2255_v39 }
 0x1b7   : > { %2059 = vmatprep.subr.bf16.mxu1 %v2452_v31 }
 0x1ba   : > { %2060 = vmatpush3.bf16.msra.mxu1 %v2256_v40 }
 0x1bb   : > { %2061 = vmatprep.subr.bf16.mxu1 %v2452_v31 }
 0x1be   : > { %2062 = vmatpush3.bf16.msra.mxu1 %v2257_v41 }
 0x1bf   : > { %2079 = vmatprep.subr.bf16.mxu1 %v2452_v31 }
 0x1c1   : > { %2064 = vmatmul.mubr.msk.bf16.vlgmr.msra.gmra.mrb[4].mxu1 %vm692_vm2, %v2767_v38 }
 0x1c2   : > { %2081 = vmatprep.mubr.msk.bf16.mxu1 %vm2453_vm1, %v2452_v31 }
 0x284   : > { %v730_v42 = vpop.f32.mrb[0].mxu1 }
 0x285   : > { %v2053_v43 = vpop.f32.mrb[1].mxu1  ;;  %v731_v62 = vadd.f32 %v730_v42, %v667_v56 }
 0x286   : > { %v733_v44 = vpop.f32.mrb[2].mxu1 }
 0x287   : > { %v2054_v46 = vpop.f32.mrb[3].mxu1  ;;  %v2801_v63 = vpack.c.bf16 %v731_v62, %v731_v62  ;;  %v734_v1 = vadd.f32 %v733_v44, %v667_v56  ;;  %v884_v29 = vpop.f32.mrb[0].mxu0 }
 0x288   : > { %v885_v30 = vadd.f32 %v884_v29, %v825_v28  ;;  %v2077_v32 = vpop.f32.mrb[1].mxu0 }
 0x289   : > { %v892_v2 = vpack.c.bf16 %v734_v1, %v734_v1  ;;  %v887_v34 = vpop.f32.mrb[2].mxu0 }
 0x28a   : > { %v2833_v33 = vpack.c.bf16 %v885_v30, %v885_v30  ;;  %v2078_v38 = vpop.f32.mrb[3].mxu0  ;;  %v888_v39 = vadd.f32 %v887_v34, %v825_v28 }
 0x28c   : > { %v1020_v37 = vsel %vm1018_vm5, %v2833_v33, 0  ;;  %v896_v40 = vpack.c.bf16 %v888_v39, %v888_v39 }
 0x28d   : > { %2092 = vmatpush3.bf16.msra.mxu0 %v1020_v37 }
 0x28e   : > { %2103 = vmatprep.subr.bf16.mxu0 %v2452_v31  ;;  %v1066_v41 = vsel %vm1018_vm5, %v896_v40, 0 }
 0x294   : > { %v807_v52 = vpop.f32.mrb[4].mxu1 }
 0x295   : > { %v808_v53 = vadd.f32 %v807_v52, %v748_v50  ;;  %v2065_v54 = vpop.f32.mrb[5].mxu1 }
 0x296   : > { %v810_v55 = vpop.f32.mrb[6].mxu1 }
 0x297   : > { %v893_v57 = vpack.c.bf16 %v808_v53, %v808_v53  ;;  %v811_v58 = vadd.f32 %v810_v55, %v748_v50  ;;  %v2066_v59 = vpop.f32.mrb[7].mxu1 }
 0x299   : > { %v902_v60 = vsel %vm897_vm3, %v893_v57, 0  ;;  %v894_v61 = vpack.c.bf16 %v811_v58, %v811_v58 }
 0x29a   : > { %2080 = vmatpush3.bf16.xpose.msra.mxu1 %v902_v60 }
 0x29b   : > { %1166 = vrot.lane.b32.xlu1 %v894_v61, %s2454_s29  ;;  %2085 = vmatprep.subr.bf16.mxu1 %v2452_v31  ;;  %v948_v0 = vsel %vm897_vm3, %v894_v61, 0 }
 0x2a1   : > { %2082 = vmatmul.mubr.msk.bf16.vlgmr.msra.gmra.mrb[8].mxu1 %vm897_vm3, %v2801_v63 }
 0x2a2   : > { %2086 = vmatpush3.bf16.xpose.msra.mxu1 %v948_v0  ;;  %2087 = vmatprep.mubr.msk.bf16.mxu1 %vm2453_vm1, %v2452_v31 }
 0x2a3   : > { %2097 = vmatprep.subr.bf16.mxu1 %v2452_v31 }
 0x2a9   : > { %2088 = vmatmul.mubr.msk.bf16.vlgmr.msra.gmra.mrb[12].mxu1 %vm897_vm3, %v892_v2 }
 0x2aa   : > { %2099 = vmatprep.mubr.msk.bf16.mxu1 %vm2453_vm1, %v2452_v31  ;;  %2098 = vmatpush3.bf16.msra.mxu1 %v1066_v41  ;;  %v2263_v41 = vld [vmem:[%s2674_s24 + $0x8] sm:$0xff]  }
 0x2ab   : > { %2109 = vmatprep.subr.bf16.mxu1 %v2452_v31 }
 0x30d   : > { %v1167_v42 = vpop.permute.xlu1 %1166 }
 0x30e   : > { %v1172_v58 = vsel %vm897_vm3, %v1167_v42, 0  ;;  %v2264_v42 = vld [vmem:[%s2674_s24 + $0x10] sm:$0xff]  }
 0x374   : > { %v938_v7 = vpop.f32.mrb[8].mxu1 }
 0x375   : > { %v2083_v8 = vpop.f32.mrb[9].mxu1  ;;  %v991_v9 = vsel %vm990_vm4, %v938_v7, -inf }
 0x376   : > { %992 = vmax.xlane.f32.xlu0 %v991_v9  ;;  %v941_v10 = vpop.f32.mrb[10].mxu1 }
 0x377   : > { %v2084_v11 = vpop.f32.mrb[11].mxu1 }
 0x37c   : > { %v984_v12 = vpop.f32.mrb[12].mxu1 }
 0x37d   : > { %v2089_v13 = vpop.f32.mrb[13].mxu1  ;;  %v994_v14 = vsel %vm990_vm4, %v984_v12, -inf }
 0x37e   : > { %995 = vmax.xlane.f32.xlu0 %v994_v14  ;;  %v987_v15 = vpop.f32.mrb[14].mxu1 }
 0x37f   : > { %v2090_v16 = vpop.f32.mrb[15].mxu1 }
 0x394   : > { %1114 = vrot.lane.b32.xlu0 %v893_v57, %s2454_s29 }
 0x403   : > { %v993_v17 = vpop.xlane.xlu0 %992 }
 0x404   : > { %v997_v18 = vsub.f32 %v938_v7, %v993_v17 }
 0x406   : > { %v999_v19 = vmul.f32 1.442695, %v997_v18 }
 0x408   : > { %2278 = vpow2.f32 %v999_v19 }
 0x40b   : > { %v996_v20 = vpop.xlane.xlu0 %995 }
 0x40c   : > { %v998_v21 = vsub.f32 %v984_v12, %v996_v20 }
 0x40e   : > { %v1001_v22 = vmul.f32 1.442695, %v998_v21 }
 0x40f   : > { %v1115_v50 = vpop.permute.xlu0 %1114 }
 0x410   : > { %2280 = vpow2.f32 %v1001_v22  ;;  %v1120_v53 = vsel %vm897_vm3, %v1115_v50, 0 }
 0x412   : > { %v2279_v23 = vpop.eup %2278 }
 0x413   : > { %v1003_v24 = vsel %vm990_vm4, %v2279_v23, 0.0 }
 0x414   : > { %1004 = vadd.xlane.f32.xlu1 %v1003_v24 }
 0x41a   : > { %v2281_v25 = vpop.eup %2280 }
 0x41b   : > { %v1006_v26 = vsel %vm990_vm4, %v2281_v25, 0.0 }
 0x41c   : > { %1007 = vadd.xlane.f32.xlu1 %v1006_v26 }
 0x42d   : > { %1111 = vrot.lane.b32.xlu1 %v2801_v63, %s2454_s29 }
 0x431   : > { %1163 = vrot.lane.b32.xlu1 %v892_v2, %s2454_s29 }
 0x4a1   : > { %v1005_v43 = vpop.xlane.xlu1 %1004 }
 0x4a2   : > { %2282 = vrcp.f32 %v1005_v43  ;;  %v2265_v43 = vld [vmem:[%s2674_s24 + $0x18] sm:$0xff]  }
 0x4a9   : > { %v1008_v44 = vpop.xlane.xlu1 %1007 }
 0x4aa   : > { %2284 = vrcp.f32 %v1008_v44 }
 0x4ac   : > { %v2283_v45 = vpop.eup %2282 }
 0x4ad   : > { %v1011_v46 = vmul.f32 %v2283_v45, %v2279_v23  ;;  %v1112_v57 = vpop.permute.xlu1 %1111 }
 0x4af   : > { %v1013_v52 = vpack.c.bf16 %v1011_v46, %v1011_v46 }
 0x4b1   : > { %2094 = vmatmul.mubr.msk.bf16.vlgmr.msra.gmra.mrb[4].mxu0 %vm990_vm4, %v1013_v52  ;;  %v1164_v59 = vpop.permute.xlu1 %1163 }
 0x4b2   : > { %2104 = vmatpush3.bf16.xpose.msra.mxu0 %v1120_v53  ;;  %2105 = vmatprep.mubr.msk.bf16.mxu0 %vm2453_vm1, %v2452_v31 }
 0x4b3   : > { %2115 = vmatprep.subr.bf16.mxu0 %v2452_v31 }
 0x4b4   : > { %v2285_v54 = vpop.eup %2284 }
 0x4b5   : > { %v1012_v55 = vmul.f32 %v2285_v54, %v2281_v25 }
 0x4b7   : > { %v1014_v56 = vpack.c.bf16 %v1012_v55, %v1012_v55 }
 0x4b9   : > { %2100 = vmatmul.mubr.msk.bf16.vlgmr.msra.gmra.mrb[16].mxu1 %vm990_vm4, %v1014_v56  ;;  %2106 = vmatmul.mubr.msk.bf16.vlgmr.msra.gmra.mrb[8].mxu0 %vm897_vm3, %v1112_v57 }
 0x4ba   : > { %2110 = vmatpush3.bf16.xpose.msra.mxu1 %v1172_v58  ;;  %2111 = vmatprep.mubr.msk.bf16.mxu1 %vm2453_vm1, %v2452_v31 }
 0x4bb   : > { %2121 = vmatprep.subr.bf16.mxu1 %v2452_v31  ;;  %2117 = vmatprep.mubr.msk.bf16.mxu0 %vm2453_vm1, %v2452_v31 }
 0x4c1   : > { %2112 = vmatmul.mubr.msk.bf16.vlgmr.msra.gmra.mrb[20].mxu1 %vm897_vm3, %v1164_v59 }
 0x4c2   : > { %2123 = vmatprep.mubr.msk.bf16.mxu1 %vm2453_vm1, %v2452_v31 }
 0x584   : > { %v2859_v60 = vpop.f32.mrb[4].mxu0 }
 0x585   : > { %v2095_v61 = vpop.f32.mrb[5].mxu0  ;;  %v1108_v59 = vpack.c.bf16 %v2859_v60, %v2859_v60 }
 0x586   : > { %v1059_v62 = vpop.f32.mrb[6].mxu0 }
 0x587   : > { %v2096_v63 = vpop.f32.mrb[7].mxu0 }
 0x58c   : > { %v2861_v0 = vpop.f32.mrb[16].mxu1  ;;  %v1156_v1 = vpop.f32.mrb[8].mxu0 }
 0x58d   : > { %v2101_v2 = vpop.f32.mrb[17].mxu1  ;;  %v2107_v3 = vpop.f32.mrb[9].mxu0  ;;  %v1214_v4 = vsel %vm990_vm4, %v1156_v1, -inf  ;;  %v1109_v61 = vpack.c.bf16 %v2861_v0, %v2861_v0 }
 0x58e   : > { %1215 = vmax.xlane.f32.xlu0 %v1214_v4  ;;  %v1105_v5 = vpop.f32.mrb[18].mxu1  ;;  %v1159_v6 = vpop.f32.mrb[10].mxu0  ;;  %v1360_v3 = vsub.s32 3, %v2785_v47 }
 0x58f   : > { %v2102_v7 = vpop.f32.mrb[19].mxu1  ;;  %v2108_v8 = vpop.f32.mrb[11].mxu0 }
 0x590   : > { %v1361_v60 = vrot.slane %v2789_v49, %v1360_v3 }
 0x594   : > { %v1208_v9 = vpop.f32.mrb[20].mxu1 }
 0x595   : > { %v2113_v10 = vpop.f32.mrb[21].mxu1  ;;  %v1217_v11 = vsel %vm990_vm4, %v1208_v9, -inf }
 0x596   : > { %1218 = vmax.xlane.f32.xlu1 %v1217_v11  ;;  %v1211_v12 = vpop.f32.mrb[22].mxu1 }
 0x597   : > { %v2114_v13 = vpop.f32.mrb[23].mxu1 }
 0x5a7   : > { %1288 = vrot.lane.b32.xlu1 %v896_v40, %s2454_s29  ;;  %v2262_v40 = vld [vmem:[%s2674_s24] sm:$0xff]  }
 0x61b   : > { %v1216_v14 = vpop.xlane.xlu0 %1215 }
 0x61c   : > { %v1220_v15 = vsub.f32 %v1156_v1, %v1216_v14 }
 0x61e   : > { %v1222_v16 = vmul.f32 1.442695, %v1220_v15 }
 0x620   : > { %2286 = vpow2.f32 %v1222_v16 }
 0x623   : > { %v1219_v17 = vpop.xlane.xlu1 %1218 }
 0x624   : > { %v1221_v18 = vsub.f32 %v1208_v9, %v1219_v17 }
 0x626   : > { %v1224_v19 = vmul.f32 1.442695, %v1221_v18 }
 0x627   : > { %v1289_v20 = vpop.permute.xlu1 %1288 }
 0x628   : > { %2288 = vpow2.f32 %v1224_v19  ;;  %v1294_v21 = vsel %vm1018_vm5, %v1289_v20, 0 }
 0x629   : > { %2122 = vmatpush3.bf16.msra.mxu1 %v1294_v21  ;;  %v2266_v21 = vld [vmem:[%s2680_s27] sm:$0xff]  }
 0x62a   : > { %v2287_v22 = vpop.eup %2286  ;;  %2139 = vmatprep.subr.bf16.mxu1 %v2452_v31 }
 0x62b   : > { %v1226_v23 = vsel %vm990_vm4, %v2287_v22, 0.0 }
 0x62c   : > { %1227 = vadd.xlane.f32.xlu0 %v1226_v23  ;;  %v2268_v23 = vld [vmem:[%s2680_s27 + $0x10] sm:$0xff]  }
 0x632   : > { %v2289_v24 = vpop.eup %2288 }
 0x633   : > { %v1229_v25 = vsel %vm990_vm4, %v2289_v24, 0.0 }
 0x634   : > { %1230 = vadd.xlane.f32.xlu0 %v1229_v25  ;;  %v2270_v25 = vld [vmem:[%s2710_s6] sm:$0xff]  }
 0x64a   : > { %1239 = vrot.lane.b32.xlu0 %v2833_v33, %s2454_s29 }
 0x6b9   : > { %v1228_v26 = vpop.xlane.xlu0 %1227 }
 0x6ba   : > { %2290 = vrcp.f32 %v1228_v26  ;;  %v2271_v26 = vld [vmem:[%s2710_s6 + $0x8] sm:$0xff]  }
 0x6c1   : > { %v1231_v28 = vpop.xlane.xlu0 %1230 }
 0x6c2   : > { %2292 = vrcp.f32 %v1231_v28  ;;  %v2272_v28 = vld [vmem:[%s2710_s6 + $0x10] sm:$0xff]  }
 0x6c4   : > { %v2291_v29 = vpop.eup %2290 }
 0x6c5   : > { %v1234_v30 = vmul.f32 %v2291_v29, %v2287_v22  ;;  %v1240_v32 = vpop.permute.xlu0 %1239  ;;  %v2267_v22 = vld [vmem:[%s2680_s27 + $0x8] sm:$0xff]  }
 0x6c6   : > { %v1245_v34 = vsel %vm1018_vm5, %v1240_v32, 0  ;;  %v2273_v29 = vld [vmem:[%s2710_s6 + $0x18] sm:$0xff]   ;;  %v2275_v32 = vld [vmem:[%s2710_s6 + $0x28] sm:$0xff]  }
 0x6c7   : > { %2116 = vmatpush3.bf16.msra.mxu0 %v1245_v34  ;;  %v1236_v37 = vpack.c.bf16 %v1234_v30, %v1234_v30  ;;  %v2274_v30 = vld [vmem:[%s2710_s6 + $0x20] sm:$0xff]  }
 0x6c8   : > { %2127 = vmatprep.subr.bf16.mxu0 %v2452_v31 }
 0x6ca   : > { %2118 = vmatmul.mubr.msk.bf16.vlgmr.msra.gmra.mrb[12].mxu0 %vm990_vm4, %v1236_v37 }
 0x6cb   : > { %2135 = vmatprep.mubr.msk.bf16.mxu0 %vm2453_vm1, %v2452_v31  ;;  %2128 = vmatpush3.bf16.msra.mxu0 %v2262_v40 }
 0x6cc   : > { %v2293_v33 = vpop.eup %2292  ;;  %2129 = vmatprep.subr.bf16.mxu0 %v2452_v31 }
 0x6cd   : > { %v1235_v38 = vmul.f32 %v2293_v33, %v2289_v24  ;;  %v2269_v24 = vld [vmem:[%s2680_s27 + $0x18] sm:$0xff]  }
 0x6cf   : > { %v1237_v39 = vpack.c.bf16 %v1235_v38, %v1235_v38  ;;  %2130 = vmatpush3.bf16.msra.mxu0 %v2263_v41  ;;  %v2927_v41 = vld [vmem:[%s2726_s19] sm:$0xf] }
 0x6d0   : > { %2131 = vmatprep.subr.bf16.mxu0 %v2452_v31 }
 0x6d1   : > { %2124 = vmatmul.mubr.msk.bf16.vlgmr.msra.gmra.mrb[24].mxu1 %vm990_vm4, %v1237_v39 }
 0x6d2   : > { %2147 = vmatprep.mubr.msk.bf16.mxu1 %vm2453_vm1, %v2452_v31  ;;  %2140 = vmatpush3.bf16.msra.mxu1 %v2266_v21 }
 0x6d3   : > { %2132 = vmatpush3.bf16.msra.mxu0 %v2264_v42  ;;  %2141 = vmatprep.subr.bf16.mxu1 %v2452_v31 }
 0x6d4   : > { %2133 = vmatprep.subr.bf16.mxu0 %v2452_v31 }
 0x6d6   : > { %2142 = vmatpush3.bf16.msra.mxu1 %v2267_v22 }
 0x6d7   : > { %2134 = vmatpush3.bf16.msra.mxu0 %v2265_v43  ;;  %2143 = vmatprep.subr.bf16.mxu1 %v2452_v31  ;;  %v1468_v43 = vrot.slane %v2927_v41, %v666_v51  ;;  %v2277_v51 = vld [vmem:[%s2710_s6 + $0x38] sm:$0xff]  }
 0x6d8   : > { %2151 = vmatprep.subr.bf16.mxu0 %v2452_v31 }
 0x6da   : > { %2144 = vmatpush3.bf16.msra.mxu1 %v2268_v23 }
 0x6db   : > { %2145 = vmatprep.subr.bf16.mxu1 %v2452_v31 }
 0x6de   : > { %2146 = vmatpush3.bf16.msra.mxu1 %v2269_v24 }
 0x79d   : > { %v1281_v44 = vpop.f32.mrb[12].mxu0 }
 0x79e   : > { %v1336_v45 = vpack.c.bf16 %v1281_v44, %v1281_v44  ;;  %v2119_v46 = vpop.f32.mrb[13].mxu0 }
 0x79f   : > { %v1284_v50 = vpop.f32.mrb[14].mxu0  ;;  %v1474_v46 = vrot.slane %v2927_v41, %v747_v48 }
 0x7a0   : > { %1340 = vrot.lane.b32.xlu1 %v1336_v45, %s2455_s13  ;;  %v2120_v52 = vpop.f32.mrb[15].mxu0 }
 0x7a4   : > { %v1330_v53 = vpop.f32.mrb[24].mxu1 }
 0x7a5   : > { %v1337_v54 = vpack.c.bf16 %v1330_v53, %v1330_v53  ;;  %v2125_v55 = vpop.f32.mrb[25].mxu1 }
 0x7a6   : > { %v1333_v56 = vpop.f32.mrb[26].mxu1 }
 0x7a7   : > { %1342 = vrot.lane.b32.xlu1 %v1337_v54, %s2455_s13  ;;  %v2126_v57 = vpop.f32.mrb[27].mxu1 }
 0x7a8   : > { %v2276_v57 = vld [vmem:[%s2710_s6 + $0x30] sm:$0xff]  }
 0x812   : > { %v1341_v58 = vpop.permute.xlu1 %1340 }
 0x813   : > { %v1346_v63 = vsel %vm897_vm3, %v1108_v59, %v1341_v58  ;;  %v1968_v58 = vld [vmem:[%s595_s16] ss:$0 sm:$0xff] }
 0x819   : > { %v1343_v62 = vpop.permute.xlu1 %1342 }
 0x81a   : > { %v1349_v1 = vsel %vm897_vm3, %v1109_v61, %v1343_v62 }
 0x81b   : > { %v1962_v2 = vcombine.low %v1346_v63, %v1349_v1 }
 0x81d   : > { %2136 = vmatmul.mubr.msk.bf16.vlgmr.msra.gmra.mrb[16].mxu0 %vm692_vm2, %v1962_v2 }
 0x81e   : > { %2167 = vmatprep.mubr.msk.bf16.mxu0 %vm2453_vm1, %v2452_v31  ;;  %2152 = vmatpush3.bf16.msra.mxu0 %v2270_v25 }
 0x81f   : > { %2153 = vmatprep.subr.bf16.mxu0 %v2452_v31 }
 0x822   : > { %2154 = vmatpush3.bf16.msra.mxu0 %v2271_v26 }
 0x823   : > { %2155 = vmatprep.subr.bf16.mxu0 %v2452_v31 }
 0x826   : > { %2156 = vmatpush3.bf16.msra.mxu0 %v2272_v28 }
 0x827   : > { %2157 = vmatprep.subr.bf16.mxu0 %v2452_v31 }
 0x82a   : > { %2158 = vmatpush3.bf16.msra.mxu0 %v2273_v29  ;;  %v1704_v29 = vrot.slane %v2927_v41, %v824_v27 }
 0x82b   : > { %2159 = vmatprep.subr.bf16.mxu0 %v2452_v31 }
 0x82e   : > { %2160 = vmatpush3.bf16.msra.mxu0 %v2274_v30 }
 0x82f   : > { %2161 = vmatprep.subr.bf16.mxu0 %v2452_v31 }
 0x832   : > { %2162 = vmatpush3.bf16.msra.mxu0 %v2275_v32  ;;  %v1710_v32 = vrot.slane %v2927_v41, %v1360_v3 }
 0x833   : > { %2163 = vmatprep.subr.bf16.mxu0 %v2452_v31 }
 0x836   : > { %2164 = vmatpush3.bf16.msra.mxu0 %v2276_v57 }
 0x837   : > { %2165 = vmatprep.subr.bf16.mxu0 %v2452_v31 }
 0x83a   : > { %2166 = vmatpush3.bf16.msra.mxu0 %v2277_v51 }
 0x8f0   : > { %v1428_v4 = vpop.f32.mrb[16].mxu0 }
 0x8f1   : > { %v1429_v5 = vadd.f32 %v1428_v4, %v1361_v60  ;;  %v2137_v0 = vpop.f32.mrb[17].mxu0 }
 0x8f2   : > { %v1431_v6 = vpop.f32.mrb[18].mxu0 }
 0x8f3   : > { %v1432_v7 = vadd.f32 %v1431_v6, %v1361_v60  ;;  %v2138_v8 = vpop.f32.mrb[19].mxu0  ;;  %v1436_v9 = vadd.f32 %v1429_v5, %v2759_v35  ;;  %v1582_v5 = vsub.s32 4, %v2785_v47 }
 0x8f5   : > { %v1438_v10 = vsel %vm692_vm2, %v1436_v9, 0.0  ;;  %v1437_v11 = vadd.f32 %v1432_v7, %v2761_v36  ;;  %v1583_v31 = vrot.slane %v2789_v49, %v1582_v5 }
 0x8f6   : > { %1439 = vadd.xlane.f32.xlu0 %v1438_v10 }
 0x8f7   : > { %v1441_v12 = vsel %vm692_vm2, %v1437_v11, 0.0 }
 0x8f8   : > { %1442 = vadd.xlane.f32.xlu1 %v1441_v12 }
 0x983   : > { %v1440_v13 = vpop.xlane.xlu0 %1439 }
 0x984   : > { %v1445_v14 = vmul.f32 0.015625, %v1440_v13 }
 0x985   : > { %v1443_v15 = vpop.xlane.xlu1 %1442 }
 0x986   : > { %v1447_v16 = vsub.f32 %v1436_v9, %v1445_v14  ;;  %v1446_v17 = vmul.f32 0.015625, %v1443_v15 }
 0x988   : > { %v1448_v18 = vsub.f32 %v1437_v11, %v1446_v17  ;;  %v1449_v19 = vmul.f32 %v1447_v16, %v1447_v16 }
 0x98a   : > { %v1451_v35 = vsel %vm692_vm2, %v1449_v19, 0.0  ;;  %v1450_v20 = vmul.f32 %v1448_v18, %v1448_v18 }
 0x98b   : > { %1452 = vadd.xlane.f32.xlu0 %v1451_v35 }
 0x98c   : > { %v1454_v36 = vsel %vm692_vm2, %v1450_v20, 0.0 }
 0x98f   : > { %1455 = vadd.xlane.f32.xlu0 %v1454_v36 }
 0xa18   : > { %v1453_v34 = vpop.xlane.xlu0 %1452 }
 0xa19   : > { %v1457_v37 = vmul.f32 0.015625, %v1453_v34 }
 0xa1b   : > { %v1459_v33 = vadd.f32 1e-05, %v1457_v37 }
 0xa1c   : > { %v1456_v38 = vpop.xlane.xlu0 %1455 }
 0xa1d   : > { %2294 = vrsqrt.f32 %v1459_v33  ;;  %v1458_v39 = vmul.f32 0.015625, %v1456_v38 }
 0xa1f   : > { %v1460_v40 = vadd.f32 1e-05, %v1458_v39 }
 0xa21   : > { %2296 = vrsqrt.f32 %v1460_v40 }
 0xa27   : > { %v2295_v42 = vpop.eup %2294 }
 0xa28   : > { %v1463_v44 = vmul.f32 %v2295_v42, %v1447_v16 }
 0xa2a   : > { %v1469_v50 = vmul.f32 %v1468_v43, %v1463_v44 }
 0xa2b   : > { %v2297_v45 = vpop.eup %2296 }
 0xa2c   : > { %v1464_v52 = vmul.f32 %v2297_v45, %v1448_v18  ;;  %v1475_v54 = vadd.f32 %v1474_v46, %v1469_v50 }
 0xa2e   : > { %v1470_v53 = vmul.f32 %v1468_v43, %v1464_v52 }
 0xa30   : > { %v1476_v55 = vadd.f32 %v1474_v46, %v1470_v53 }
 0xa32   : > { %v1477_v56 = vpack.c.bf16 %v1476_v55, %v1475_v54 }
 0xa34   : > { %2148 = vmatmul.mubr.msk.bf16.vlgmr.msra.gmra.mrb[28].mxu1 %vm692_vm2, %v1477_v56 }
 0xb07   : > { %v1554_v48 = vpop.f32.mrb[28].mxu1 }
 0xb08   : > { %v1555_v59 = vadd.f32 %v1968_v58, %v1554_v48  ;;  %v2149_v61 = vpop.f32.mrb[29].mxu1 }
 0xb09   : > { %v1557_v62 = vpop.f32.mrb[30].mxu1 }
 0xb0a   : > { %v1558_v63 = vadd.f32 %v1968_v58, %v1557_v62  ;;  %v2150_v1 = vpop.f32.mrb[31].mxu1  ;;  %v1561_v2 = vmax.f32 %v1555_v59, 0.0 }
 0xb0c   : > { %v1562_v60 = vmax.f32 %v1558_v63, 0.0 }
 0xb0e   : > { %v1563_v4 = vpack.c.bf16 %v1562_v60, %v1561_v2 }
 0xb10   : > { %2168 = vmatmul.mubr.bf16.vlgmr.msra.gmra.mrb[20].mxu0 %v1563_v4 }
 0xbe3   : > { %v1666_v0 = vpop.f32.mrb[20].mxu0 }
 0xbe4   : > { %v1667_v6 = vadd.f32 %v1666_v0, %v1583_v31  ;;  %v2169_v7 = vpop.f32.mrb[21].mxu0 }
 0xbe5   : > { %v1669_v8 = vpop.f32.mrb[22].mxu0 }
 0xbe6   : > { %v1670_v9 = vadd.f32 %v1669_v8, %v1583_v31  ;;  %v2170_v10 = vpop.f32.mrb[23].mxu0  ;;  %v1673_v11 = vadd.f32 %v1667_v6, %v1475_v54 }
 0xbe8   : > { %v1675_v12 = vsel %vm692_vm2, %v1673_v11, 0.0  ;;  %v1674_v13 = vadd.f32 %v1670_v9, %v1476_v55 }
 0xbe9   : > { %1676 = vadd.xlane.f32.xlu0 %v1675_v12 }
 0xbea   : > { %v1678_v14 = vsel %vm692_vm2, %v1674_v13, 0.0 }
 0xbeb   : > { %1679 = vadd.xlane.f32.xlu1 %v1678_v14 }
 0xc76   : > { %v1677_v15 = vpop.xlane.xlu0 %1676 }
 0xc77   : > { %v1681_v16 = vmul.f32 0.015625, %v1677_v15 }
 0xc78   : > { %v1680_v17 = vpop.xlane.xlu1 %1679 }
 0xc79   : > { %v1683_v18 = vsub.f32 %v1673_v11, %v1681_v16  ;;  %v1682_v19 = vmul.f32 0.015625, %v1680_v17 }
 0xc7b   : > { %v1684_v49 = vsub.f32 %v1674_v13, %v1682_v19  ;;  %v1685_v35 = vmul.f32 %v1683_v18, %v1683_v18 }
 0xc7d   : > { %v1687_v20 = vsel %vm692_vm2, %v1685_v35, 0.0  ;;  %v1686_v36 = vmul.f32 %v1684_v49, %v1684_v49 }
 0xc7e   : > { %1688 = vadd.xlane.f32.xlu0 %v1687_v20 }
 0xc7f   : > { %v1690_v21 = vsel %vm692_vm2, %v1686_v36, 0.0 }
 0xc80   : > { %1691 = vadd.xlane.f32.xlu1 %v1690_v21 }
 0xd0b   : > { %v1689_v22 = vpop.xlane.xlu0 %1688 }
 0xd0c   : > { %v1693_v23 = vmul.f32 0.015625, %v1689_v22 }
 0xd0d   : > { %v1692_v24 = vpop.xlane.xlu1 %1691 }
 0xd0e   : > { %v1695_v25 = vadd.f32 1e-05, %v1693_v23  ;;  %v1694_v26 = vmul.f32 0.015625, %v1692_v24 }
 0xd10   : > { %2298 = vrsqrt.f32 %v1695_v25  ;;  %v1696_v28 = vadd.f32 1e-05, %v1694_v26 }
 0xd12   : > { %2300 = vrsqrt.f32 %v1696_v28 }
 0xd1a   : > { %v2299_v30 = vpop.eup %2298 }
 0xd1b   : > { %v1699_v34 = vmul.f32 %v2299_v30, %v1683_v18 }
 0xd1c   : > { %v2301_v37 = vpop.eup %2300 }
 0xd1d   : > { %v1705_v33 = vmul.f32 %v1704_v29, %v1699_v34  ;;  %v1700_v38 = vmul.f32 %v2301_v37, %v1684_v49  ;;  %1718 = sbr.rel (%p1982_p4) target bundleno = 3364 (0xd24), region = 80 }
 0xd1f   : > { %v1711_v39 = vadd.f32 %v1710_v32, %v1705_v33  ;;  %v1706_v40 = vmul.f32 %v1704_v29, %v1700_v38 }
 0xd21   : > { %1713 = vst.msk [vmem:[#allocation2] sm:$0xff] %vm692_vm2, %v1711_v39  ;;  %v1712_v42 = vadd.f32 %v1710_v32, %v1706_v40  ;;  %1719 = vst.msk [vmem:[#allocation8] sm:$0xff] (!%p1982_p4), %vm692_vm2, %v1711_v39 }
 0xd23   : > { %1714 = vst.msk [vmem:[#allocation2 + $0x8] sm:$0xff] %vm692_vm2, %v1712_v42  ;;  %1720 = vst.msk [vmem:[#allocation8 + $0x8] sm:$0xff] (!%p1982_p4), %vm692_vm2, %v1712_v42 }
 0xd24 PF: > { %s3052_s6 = sadd.s32 4294967295, %s2446_s22   ;;  %s2456_s15 = smov [#allocation8]  }
 0xd25   : > { %p2963_p8 = scmp.eq.s32.totalorder %s3052_s6, 1  ;;  %s1730_s30 = sshll.u32 %s2456_s15, 4  ;;  %s1731_s30 = int_to_ptr.vmem [resolvable:$true] %s1730_s30 }
 0xd26   : > { %s2362_s26 = scalar_lea.vmem %s1731_s30, 256  ;;  %p2369_p3 = scmp.lt.s32.totalorder %s1731_s30, %s1731_s30 }
 0xd27   : > { %p2363_p1 = scmp.ne.s32.totalorder %s1731_s30, %s2362_s26  ;;  %p2370_p5 = scmp.lt.s32.totalorder %s2362_s26, %s2362_s26 }
 0xd29   : > { %p2364_p2 = pnand %p2363_p1, %p2963_p8  ;;  %p2371_p6 = por %p2370_p5, %p2369_p3 }
 0xd2b   : > { %p2365_p13 = pneg %p2364_p2 }
 0xd2d   : > { %p2372_p10 = pnand %p2371_p6, %p2365_p13 }
 0xd2f   : > { %2375 = shalt.err (!%p2372_p10)
}
 0xd30   : > { %s3054_s23 = sld [smem:[#allocation21_spill]] }
 0xd36   : > { %s2376_s28 = scalar_lea.hbm %s3054_s23, 256 }
 0xd37   : > { %p2377_p12 = scmp.ne.s32.totalorder %s3054_s23, %s2376_s28  ;;  %p2382_p9 = scmp.lt.u32.totalorder %s2376_s28, %s3054_s23 }
 0xd39   : > { %p2378_p0 = pnand %p2377_p12, %p2963_p8 }
 0xd3b   : > { %p2379_p7 = pneg %p2378_p0 }
 0xd3d   : > { %p2384_p11 = pnand %p2382_p9, %p2379_p7 }
 0xd3f   : > { %2387 = shalt.err (!%p2384_p11)
}
 0xd40   : > { %s2457_s18 = smov 128   ;;  %s2458_s12 = smov 8  }
 0xd41   : > { %2176 = dma.vmem_to_hbm [thread:$0]  (%p2963_p8), %s1731_s30, 256, %s3054_s23, [#allocation5], %s2457_s18, %s2457_s18, %s2458_s12  }
 0xd42   : > { %2421 = dma.done.wait (%p2963_p8), [#allocation5], 256  }
 0xd43   : > { %2423 = vsyncadd (%p2963_p8), [#allocation5], 4294967040 }
 0xd44 PF: > { %s28_s22 = sadd.s32 1, %s2446_s22   ;;  %s3055_s17 = sld [smem:[#allocation12_spill]] }
 0xd45   : > { %p25_p4 = scmp.ge.s32.totalorder %s28_s22, 4   ;;  %s3056_s18 = sld [smem:[#allocation13_spill]] }
 0xd46   : > { %s3057_s19 = sld [smem:[#allocation16_spill]]  ;;  %s3058_s20 = sld [smem:[#allocation14_spill]] }
 0xd47   : > { %s3059_s21 = sld [smem:[#allocation15_spill]]  ;;  %27 = sbr.rel (!%p25_p4) target bundleno = 13 (0xd), region = 147 }
 0xd4e   :  { %1746 = vsyncpa [#allocation4], 1 }
 0xd4f   :  { %1748 = vsyncpa [#allocation4 + $0x1], 1 }
 0xd50   :  { %1749 = vsyncpa [#allocation7], 1 }
 0xd51   :  { %1751 = vsyncpa [#allocation7 + $0x1], 1 }
 0xd52   :  { %1752 = vsyncpa [#allocation5], 1 }
 0xd53   :  { %1754 = vsyncpa [#allocation5 + $0x1], 1 }

</bundles_post_ra>
